<compile_context>
chip_gen: v7x
topology: tpu7x:2x2x1
jax: 0.10.0
libtpu: 0.0.40
codegen_flags: <defaults>
</compile_context>

<pallas_src>
import math

import jax
import jax.numpy as jnp
from jax.experimental import pallas as pl
from jax.experimental.pallas import tpu as pltpu

# ---------- small synthetic ViT config (real vit-base: D=768, 12 layers, 12 heads) ----
B, C, IMG, PATCH = 2, 3, 16, 8
D, HEADS, LAYERS, MLP = 32, 4, 2, 64
LN_EPS = 1e-12                      # ViTConfig.layer_norm_eps
NPATCH = (IMG // PATCH) ** 2        # 4
SEQ = NPATCH + 1                    # 5 real tokens (cls + patches)
SEQ_PAD = 8                         # sublane-aligned tokens per image
HEAD_DIM = D // HEADS               # 8
CPP = C * PATCH * PATCH             # 192
BS_PAD = B * SEQ_PAD                # 16 token rows total (incl. padding)


# --------------------------------- in-kernel helpers -----------------------------------
def _ln(x, g, b):
    mu = jnp.mean(x, axis=-1, keepdims=True)
    var = jnp.mean(jnp.square(x - mu), axis=-1, keepdims=True)
    return (x - mu) * jax.lax.rsqrt(var + LN_EPS) * g + b


def _gelu(x):
    # exact (erf-based) GELU, matching HF ViT's default "gelu" activation
    return 0.5 * x * (1.0 + jax.lax.erf(x * 0.7071067811865476))


# --------------------------------- fused forward kernel --------------------------------
def _vit_forward_kernel(p_ref, pos_ref, mask_ref, pool_ref,
                        patch_w_ref,
                        ln1_g_ref, ln1_b_ref, wqkv_ref, bqkv_ref, wo_ref, bo_ref,
                        ln2_g_ref, ln2_b_ref, w1_ref, b1_ref, w2_ref, b2_ref,
                        lnf_g_ref, lnf_b_ref, fc_w_ref, fc_b_ref,
                        o_ref):
    # --- patch embedding (Conv2d(k=P, s=P) as matmul on pre-scattered pixel rows);
    #     cls token + position embeddings + patch bias are all folded into pos_ref ---
    x = (jnp.dot(p_ref[...], patch_w_ref[...],
                 preferred_element_type=jnp.float32) + pos_ref[...])    # (BS_PAD, D) f32

    for l in range(LAYERS):                                  # static unroll, LAYERS=2
        # ---------------- self-attention block (pre-norm), fused QKV ----------------
        h = _ln(x, ln1_g_ref[l], ln1_b_ref[l])
        qkv = (jnp.dot(h.astype(jnp.bfloat16), wqkv_ref[l],
                       preferred_element_type=jnp.float32) + bqkv_ref[l])   # (BS_PAD, 3D)
        qkv = qkv.astype(jnp.bfloat16)

        # per-head scores over ALL images at once (scale folded into wqkv/bqkv),
        # stacked into a single tile so there is exactly one softmax per layer
        scores = []
        for hd in range(HEADS):                              # static unroll
            c0 = hd * HEAD_DIM
            q = qkv[:, c0:c0 + HEAD_DIM]
            k = qkv[:, D + c0:D + c0 + HEAD_DIM]
            scores.append(jax.lax.dot_general(q, k, (((1,), (1,)), ((), ())),
                                              preferred_element_type=jnp.float32))
        s = jnp.concatenate(scores, axis=0) + mask_ref[...]  # (HEADS*BS_PAD, BS_PAD)
        s = s - jnp.max(s, axis=-1, keepdims=True)
        pr = jnp.exp(s)
        pr = pr * pl.reciprocal(jnp.sum(pr, axis=-1, keepdims=True), approx=True)
        pr = pr.astype(jnp.bfloat16)

        ctx = []
        for hd in range(HEADS):                              # static unroll
            c0 = hd * HEAD_DIM
            p_h = pr[hd * BS_PAD:(hd + 1) * BS_PAD, :]
            v_h = qkv[:, 2 * D + c0:2 * D + c0 + HEAD_DIM]
            ctx.append(jnp.dot(p_h, v_h, preferred_element_type=jnp.float32))
        ctx = jnp.concatenate(ctx, axis=-1).astype(jnp.bfloat16)          # (BS_PAD, D)

        # output projection + residual, fused
        x = x + (jnp.dot(ctx, wo_ref[l],
                         preferred_element_type=jnp.float32) + bo_ref[l])

        # ------------------------- MLP block (pre-norm) + GELU ----------------------
        h2 = _ln(x, ln2_g_ref[l], ln2_b_ref[l])
        m = _gelu(jnp.dot(h2.astype(jnp.bfloat16), w1_ref[l],
                          preferred_element_type=jnp.float32) + b1_ref[l])
        x = x + (jnp.dot(m.astype(jnp.bfloat16), w2_ref[l],
                         preferred_element_type=jnp.float32) + b2_ref[l])

    # --- final LayerNorm + mean-pool over the SEQ real tokens (incl. CLS, matching
    #     last_hidden_state.mean(dim=1)) expressed as a matmul + Linear(D,1) + sigmoid ---
    hf = _ln(x, lnf_g_ref[...], lnf_b_ref[...])
    emb = jnp.dot(pool_ref[...].astype(jnp.bfloat16), hf.astype(jnp.bfloat16),
                  preferred_element_type=jnp.float32)                    # (B, D)
    logits = (jnp.dot(emb.astype(jnp.bfloat16), fc_w_ref[...],
                      preferred_element_type=jnp.float32) + fc_b_ref[...])  # (B, 1)
    o_ref[...] = jax.nn.sigmoid(logits)


# ------------------------------------ wrapper -------------------------------------------
def _full_spec(shape):
    n = len(shape)
    return pl.BlockSpec(shape, lambda i, _n=n: (0,) * _n)


@jax.jit
def forward(params, imgs):
    # patchify (glue): NCHW -> (B, NPATCH, C*P*P) with per-patch feature order (c, ph, pw)
    p = imgs.reshape(B, C, IMG // PATCH, PATCH, IMG // PATCH, PATCH)
    p = p.transpose(0, 2, 4, 1, 3, 5).reshape(B, NPATCH, CPP)
    # token scatter done here (pure layout): slot 0 = cls, 1..NPATCH = patches, rest pad
    p = jnp.pad(p, ((0, 0), (1, SEQ_PAD - 1 - NPATCH), (0, 0)))
    p = p.reshape(BS_PAD, CPP).astype(jnp.bfloat16)

    # position table with cls token folded into slot 0, patch-embed bias folded into
    # the patch slots, zeros on padding slots; tiled over batch
    pos_tok = jnp.concatenate(
        [params["pos"][:1] + params["cls"],
         params["pos"][1:] + params["patch_b"],
         jnp.zeros((SEQ_PAD - SEQ, D), jnp.float32)], axis=0)            # (SEQ_PAD, D)
    pos_full = jnp.tile(pos_tok, (B, 1))                                 # (BS_PAD, D)

    # constant attention mask: query attends only to REAL tokens of its OWN image;
    # tiled over heads so it is added once to the stacked score tile
    qi = jnp.arange(BS_PAD)[:, None]
    kj = jnp.arange(BS_PAD)[None, :]
    ok = (qi // SEQ_PAD == kj // SEQ_PAD) & ((kj % SEQ_PAD) < SEQ)
    mask = jnp.where(ok, 0.0, -1e30).astype(jnp.float32)                 # (BS_PAD, BS_PAD)
    mask_full = jnp.tile(mask, (HEADS, 1))                               # (HEADS*BS_PAD, BS_PAD)

    # mean over the SEQ real tokens of each image (padding rows get weight 0)
    pool_row = jnp.concatenate([jnp.full((1, SEQ), 1.0 / SEQ, jnp.float32),
                                jnp.zeros((1, SEQ_PAD - SEQ), jnp.float32)], axis=1)
    pool = jnp.kron(jnp.eye(B, dtype=jnp.float32), pool_row)             # (B, BS_PAD)

    operands = (p, pos_full, mask_full, pool,
                params["patch_w"],
                params["ln1_g"], params["ln1_b"],
                params["wqkv"], params["bqkv"],
                params["wo"], params["bo"],
                params["ln2_g"], params["ln2_b"],
                params["w1"], params["b1"],
                params["w2"], params["b2"],
                params["lnf_g"], params["lnf_b"],
                params["fc_w"], params["fc_b"])

    return pl.pallas_call(
        _vit_forward_kernel,
        out_shape=jax.ShapeDtypeStruct((B, 1), jnp.float32),
        grid=(1,),
        in_specs=[_full_spec(t.shape) for t in operands],
        out_specs=_full_spec((B, 1)),
        compiler_params=pltpu.CompilerParams(
            dimension_semantics=("arbitrary",)),
    )(*operands)


# ---------------------------------- parameter init -------------------------------------
def init_params(key):
    ks = iter(jax.random.split(key, 16))

    def nrm(shape):
        return 0.02 * jax.random.normal(next(ks), shape, jnp.float32)

    ones = lambda s: jnp.ones(s, jnp.float32)
    zeros = lambda s: jnp.zeros(s, jnp.float32)

    # fold the 1/sqrt(HEAD_DIM) attention scale into the Q columns of wqkv / bqkv
    qscale = jnp.concatenate([jnp.full((D,), 1.0 / math.sqrt(HEAD_DIM), jnp.float32),
                              jnp.ones((2 * D,), jnp.float32)])
    wqkv = nrm((LAYERS, D, 3 * D)) * qscale
    bqkv = nrm((LAYERS, 1, 3 * D)) * qscale

    return {
        # matmul weights stored in bf16 (native MXU path); biases/LN params stay f32
        "patch_w": nrm((CPP, D)).astype(jnp.bfloat16),   # Conv2d weight flattened (c,ph,pw) x D
        "patch_b": nrm((1, D)),                          # folded into pos_full in forward()
        "cls": nrm((1, D)),
        "pos": nrm((SEQ, D)),
        "ln1_g": ones((LAYERS, 1, D)), "ln1_b": zeros((LAYERS, 1, D)),
        "wqkv": wqkv.astype(jnp.bfloat16), "bqkv": bqkv,
        "wo": nrm((LAYERS, D, D)).astype(jnp.bfloat16), "bo": nrm((LAYERS, 1, D)),
        "ln2_g": ones((LAYERS, 1, D)), "ln2_b": zeros((LAYERS, 1, D)),
        "w1": nrm((LAYERS, D, MLP)).astype(jnp.bfloat16), "b1": nrm((LAYERS, 1, MLP)),
        "w2": nrm((LAYERS, MLP, D)).astype(jnp.bfloat16), "b2": nrm((LAYERS, 1, D)),
        "lnf_g": ones((1, D)), "lnf_b": zeros((1, D)),
        "fc_w": nrm((D, 1)).astype(jnp.bfloat16),         # nn.Linear(hidden, 1)
        "fc_b": nrm((1, 1)),
    }
    # TODO(synk): pretrained google/vit-base-patch16-224 weights cannot be loaded here;
    # deterministic synthetic weights with the identical architecture are used instead.


# --------------------------------------- main -------------------------------------------
if __name__ == "__main__":
    key = jax.random.PRNGKey(0)
    pkey, xkey = jax.random.split(key)
    params = init_params(pkey)
    merged_imgs = jax.random.normal(xkey, (B, C, IMG, IMG), jnp.float32)   # NCHW

    out = forward(params, merged_imgs)
    out = jax.block_until_ready(out)

    assert out.shape == (B, 1), out.shape
    assert bool(jnp.all(jnp.isfinite(out)))
    assert bool(jnp.all((out > 0.0) & (out < 1.0)))   # sigmoid range
    print("KERNEL_OK")
</pallas_src>

<mosaic_0001>
module attributes {stable_mosaic.version = 11 : i64} {
  func.func @_vit_forward_kernel(%arg0: i32, %arg1: memref<16x192xbf16, #tpu.memory_space<vmem>>, %arg2: memref<16x32xf32, #tpu.memory_space<vmem>>, %arg3: memref<64x16xf32, #tpu.memory_space<vmem>>, %arg4: memref<2x16xf32, #tpu.memory_space<vmem>>, %arg5: memref<192x32xbf16, #tpu.memory_space<vmem>>, %arg6: memref<2x1x32xf32, #tpu.memory_space<vmem>>, %arg7: memref<2x1x32xf32, #tpu.memory_space<vmem>>, %arg8: memref<2x32x96xbf16, #tpu.memory_space<vmem>>, %arg9: memref<2x1x96xf32, #tpu.memory_space<vmem>>, %arg10: memref<2x32x32xbf16, #tpu.memory_space<vmem>>, %arg11: memref<2x1x32xf32, #tpu.memory_space<vmem>>, %arg12: memref<2x1x32xf32, #tpu.memory_space<vmem>>, %arg13: memref<2x1x32xf32, #tpu.memory_space<vmem>>, %arg14: memref<2x32x64xbf16, #tpu.memory_space<vmem>>, %arg15: memref<2x1x64xf32, #tpu.memory_space<vmem>>, %arg16: memref<2x64x32xbf16, #tpu.memory_space<vmem>>, %arg17: memref<2x1x32xf32, #tpu.memory_space<vmem>>, %arg18: memref<1x32xf32, #tpu.memory_space<vmem>>, %arg19: memref<1x32xf32, #tpu.memory_space<vmem>>, %arg20: memref<32x1xbf16, #tpu.memory_space<vmem>>, %arg21: memref<1x1xf32, #tpu.memory_space<vmem>>, %arg22: memref<2x1xf32, #tpu.memory_space<vmem>>) attributes {dimension_semantics = [#tpu.dimension_semantics<arbitrary>], iteration_bounds = array<i64: 1>, scalar_prefetch = 0 : i64, scratch_operands = 0 : i64, tpu.core_type = #tpu.core_type<tc>, window_params = [{pipeline_mode = #tpu.pipeline_mode<synchronous>, transform_indices = @transform_0, window_bounds = array<i64: 16, 192>}, {pipeline_mode = #tpu.pipeline_mode<synchronous>, transform_indices = @transform_1, window_bounds = array<i64: 16, 32>}, {pipeline_mode = #tpu.pipeline_mode<synchronous>, transform_indices = @transform_2, window_bounds = array<i64: 64, 16>}, {pipeline_mode = #tpu.pipeline_mode<synchronous>, transform_indices = @transform_3, window_bounds = array<i64: 2, 16>}, {pipeline_mode = #tpu.pipeline_mode<synchronous>, transform_indices = @transform_4, window_bounds = array<i64: 192, 32>}, {pipeline_mode = #tpu.pipeline_mode<synchronous>, transform_indices = @transform_5, window_bounds = array<i64: 2, 1, 32>}, {pipeline_mode = #tpu.pipeline_mode<synchronous>, transform_indices = @transform_6, window_bounds = array<i64: 2, 1, 32>}, {pipeline_mode = #tpu.pipeline_mode<synchronous>, transform_indices = @transform_7, window_bounds = array<i64: 2, 32, 96>}, {pipeline_mode = #tpu.pipeline_mode<synchronous>, transform_indices = @transform_8, window_bounds = array<i64: 2, 1, 96>}, {pipeline_mode = #tpu.pipeline_mode<synchronous>, transform_indices = @transform_9, window_bounds = array<i64: 2, 32, 32>}, {pipeline_mode = #tpu.pipeline_mode<synchronous>, transform_indices = @transform_10, window_bounds = array<i64: 2, 1, 32>}, {pipeline_mode = #tpu.pipeline_mode<synchronous>, transform_indices = @transform_11, window_bounds = array<i64: 2, 1, 32>}, {pipeline_mode = #tpu.pipeline_mode<synchronous>, transform_indices = @transform_12, window_bounds = array<i64: 2, 1, 32>}, {pipeline_mode = #tpu.pipeline_mode<synchronous>, transform_indices = @transform_13, window_bounds = array<i64: 2, 32, 64>}, {pipeline_mode = #tpu.pipeline_mode<synchronous>, transform_indices = @transform_14, window_bounds = array<i64: 2, 1, 64>}, {pipeline_mode = #tpu.pipeline_mode<synchronous>, transform_indices = @transform_15, window_bounds = array<i64: 2, 64, 32>}, {pipeline_mode = #tpu.pipeline_mode<synchronous>, transform_indices = @transform_16, window_bounds = array<i64: 2, 1, 32>}, {pipeline_mode = #tpu.pipeline_mode<synchronous>, transform_indices = @transform_17, window_bounds = array<i64: 1, 32>}, {pipeline_mode = #tpu.pipeline_mode<synchronous>, transform_indices = @transform_18, window_bounds = array<i64: 1, 32>}, {pipeline_mode = #tpu.pipeline_mode<synchronous>, transform_indices = @transform_19, window_bounds = array<i64: 32, 1>}, {pipeline_mode = #tpu.pipeline_mode<synchronous>, transform_indices = @transform_20, window_bounds = array<i64: 1, 1>}, {pipeline_mode = #tpu.pipeline_mode<synchronous>, transform_indices = @transform_21, window_bounds = array<i64: 2, 1>}]} {
    %c0 = arith.constant 0 : index
    %c0_0 = arith.constant 0 : index
    %0 = vector.load %arg1[%c0, %c0_0] : memref<16x192xbf16, #tpu.memory_space<vmem>>, vector<16x192xbf16>
    %c0_1 = arith.constant 0 : index
    %c0_2 = arith.constant 0 : index
    %1 = vector.load %arg5[%c0_1, %c0_2] : memref<192x32xbf16, #tpu.memory_space<vmem>>, vector<192x32xbf16>
    %cst = arith.constant dense<0.000000e+00> : vector<16x32xf32>
    %2 = tpu.matmul %0, %1, %cst {dimension_numbers = #tpu.dot_dimension_numbers<[1], [0], [0], [1], [0, 0, 1, 1], [], []>} : vector<16x192xbf16>, vector<192x32xbf16>, vector<16x32xf32> -> vector<16x32xf32>
    %c0_3 = arith.constant 0 : index
    %c0_4 = arith.constant 0 : index
    %3 = vector.load %arg2[%c0_3, %c0_4] : memref<16x32xf32, #tpu.memory_space<vmem>>, vector<16x32xf32>
    %4 = arith.addf %2, %3 : vector<16x32xf32>
    %c0_5 = arith.constant 0 : index
    %c0_6 = arith.constant 0 : index
    %c0_7 = arith.constant 0 : index
    %5 = vector.load %arg6[%c0_5, %c0_6, %c0_7] : memref<2x1x32xf32, #tpu.memory_space<vmem>>, vector<1x1x32xf32>
    %6 = vector.shape_cast %5 : vector<1x1x32xf32> to vector<1x32xf32>
    %c0_8 = arith.constant 0 : index
    %c0_9 = arith.constant 0 : index
    %c0_10 = arith.constant 0 : index
    %7 = vector.load %arg7[%c0_8, %c0_9, %c0_10] : memref<2x1x32xf32, #tpu.memory_space<vmem>>, vector<1x1x32xf32>
    %8 = vector.shape_cast %7 : vector<1x1x32xf32> to vector<1x32xf32>
    %cst_11 = arith.constant dense<0.000000e+00> : vector<16xf32>
    %9 = vector.multi_reduction <add>, %4, %cst_11 [1] : vector<16x32xf32> to vector<16xf32>
    %10 = vector.shape_cast %9 : vector<16xf32> to vector<16x1xf32>
    %cst_12 = arith.constant 3.200000e+01 : f32
    %11 = vector.broadcast %cst_12 : f32 to vector<16x1xf32>
    %12 = arith.divf %10, %11 : vector<16x1xf32>
    %13 = vector.broadcast %12 : vector<16x1xf32> to vector<16x32xf32>
    %14 = arith.subf %4, %13 : vector<16x32xf32>
    %15 = arith.mulf %14, %14 : vector<16x32xf32>
    %cst_13 = arith.constant dense<0.000000e+00> : vector<16xf32>
    %16 = vector.multi_reduction <add>, %15, %cst_13 [1] : vector<16x32xf32> to vector<16xf32>
    %17 = vector.shape_cast %16 : vector<16xf32> to vector<16x1xf32>
    %cst_14 = arith.constant 3.200000e+01 : f32
    %18 = vector.broadcast %cst_14 : f32 to vector<16x1xf32>
    %19 = arith.divf %17, %18 : vector<16x1xf32>
    %20 = vector.broadcast %12 : vector<16x1xf32> to vector<16x32xf32>
    %21 = arith.subf %4, %20 : vector<16x32xf32>
    %cst_15 = arith.constant 9.99999996E-13 : f32
    %22 = vector.broadcast %cst_15 : f32 to vector<16x1xf32>
    %23 = arith.addf %19, %22 : vector<16x1xf32>
    %24 = math.rsqrt %23 : vector<16x1xf32>
    %25 = vector.broadcast %24 : vector<16x1xf32> to vector<16x32xf32>
    %26 = arith.mulf %21, %25 : vector<16x32xf32>
    %27 = vector.broadcast %6 : vector<1x32xf32> to vector<16x32xf32>
    %28 = arith.mulf %26, %27 : vector<16x32xf32>
    %29 = vector.broadcast %8 : vector<1x32xf32> to vector<16x32xf32>
    %30 = arith.addf %28, %29 : vector<16x32xf32>
    %31 = arith.truncf %30 : vector<16x32xf32> to vector<16x32xbf16>
    %c0_16 = arith.constant 0 : index
    %c0_17 = arith.constant 0 : index
    %c0_18 = arith.constant 0 : index
    %32 = vector.load %arg8[%c0_16, %c0_17, %c0_18] : memref<2x32x96xbf16, #tpu.memory_space<vmem>>, vector<1x32x96xbf16>
    %33 = vector.shape_cast %32 : vector<1x32x96xbf16> to vector<32x96xbf16>
    %cst_19 = arith.constant dense<0.000000e+00> : vector<16x96xf32>
    %34 = tpu.matmul %31, %33, %cst_19 {dimension_numbers = #tpu.dot_dimension_numbers<[1], [0], [0], [1], [0, 0, 1, 1], [], []>} : vector<16x32xbf16>, vector<32x96xbf16>, vector<16x96xf32> -> vector<16x96xf32>
    %c0_20 = arith.constant 0 : index
    %c0_21 = arith.constant 0 : index
    %c0_22 = arith.constant 0 : index
    %35 = vector.load %arg9[%c0_20, %c0_21, %c0_22] : memref<2x1x96xf32, #tpu.memory_space<vmem>>, vector<1x1x96xf32>
    %36 = vector.shape_cast %35 : vector<1x1x96xf32> to vector<1x96xf32>
    %37 = vector.broadcast %36 : vector<1x96xf32> to vector<16x96xf32>
    %38 = arith.addf %34, %37 : vector<16x96xf32>
    %39 = arith.truncf %38 : vector<16x96xf32> to vector<16x96xbf16>
    %40 = vector.extract_strided_slice %39 {offsets = [0, 0], sizes = [16, 8], strides = [1, 1]} : vector<16x96xbf16> to vector<16x8xbf16>
    %41 = vector.extract_strided_slice %39 {offsets = [0, 32], sizes = [16, 8], strides = [1, 1]} : vector<16x96xbf16> to vector<16x8xbf16>
    %cst_23 = arith.constant dense<0.000000e+00> : vector<16x16xf32>
    %42 = tpu.matmul %40, %41, %cst_23 {dimension_numbers = #tpu.dot_dimension_numbers<[1], [1], [0], [0], [0, 0, 1, 0], [], []>} : vector<16x8xbf16>, vector<16x8xbf16>, vector<16x16xf32> -> vector<16x16xf32>
    %43 = vector.extract_strided_slice %39 {offsets = [0, 8], sizes = [16, 8], strides = [1, 1]} : vector<16x96xbf16> to vector<16x8xbf16>
    %44 = vector.extract_strided_slice %39 {offsets = [0, 40], sizes = [16, 8], strides = [1, 1]} : vector<16x96xbf16> to vector<16x8xbf16>
    %cst_24 = arith.constant dense<0.000000e+00> : vector<16x16xf32>
    %45 = tpu.matmul %43, %44, %cst_24 {dimension_numbers = #tpu.dot_dimension_numbers<[1], [1], [0], [0], [0, 0, 1, 0], [], []>} : vector<16x8xbf16>, vector<16x8xbf16>, vector<16x16xf32> -> vector<16x16xf32>
    %46 = vector.extract_strided_slice %39 {offsets = [0, 16], sizes = [16, 8], strides = [1, 1]} : vector<16x96xbf16> to vector<16x8xbf16>
    %47 = vector.extract_strided_slice %39 {offsets = [0, 48], sizes = [16, 8], strides = [1, 1]} : vector<16x96xbf16> to vector<16x8xbf16>
    %cst_25 = arith.constant dense<0.000000e+00> : vector<16x16xf32>
    %48 = tpu.matmul %46, %47, %cst_25 {dimension_numbers = #tpu.dot_dimension_numbers<[1], [1], [0], [0], [0, 0, 1, 0], [], []>} : vector<16x8xbf16>, vector<16x8xbf16>, vector<16x16xf32> -> vector<16x16xf32>
    %49 = vector.extract_strided_slice %39 {offsets = [0, 24], sizes = [16, 8], strides = [1, 1]} : vector<16x96xbf16> to vector<16x8xbf16>
    %50 = vector.extract_strided_slice %39 {offsets = [0, 56], sizes = [16, 8], strides = [1, 1]} : vector<16x96xbf16> to vector<16x8xbf16>
    %cst_26 = arith.constant dense<0.000000e+00> : vector<16x16xf32>
    %51 = tpu.matmul %49, %50, %cst_26 {dimension_numbers = #tpu.dot_dimension_numbers<[1], [1], [0], [0], [0, 0, 1, 0], [], []>} : vector<16x8xbf16>, vector<16x8xbf16>, vector<16x16xf32> -> vector<16x16xf32>
    %52 = tpu.concatenate %42, %45, %48, %51 in 0 : vector<16x16xf32>, vector<16x16xf32>, vector<16x16xf32>, vector<16x16xf32> -> vector<64x16xf32>
    %c0_27 = arith.constant 0 : index
    %c0_28 = arith.constant 0 : index
    %53 = vector.load %arg3[%c0_27, %c0_28] : memref<64x16xf32, #tpu.memory_space<vmem>>, vector<64x16xf32>
    %54 = arith.addf %52, %53 : vector<64x16xf32>
    %cst_29 = arith.constant dense<0xFF800000> : vector<64xf32>
    %55 = vector.multi_reduction <maximumf>, %54, %cst_29 [1] : vector<64x16xf32> to vector<64xf32>
    %56 = vector.shape_cast %55 : vector<64xf32> to vector<64x1xf32>
    %57 = vector.broadcast %56 : vector<64x1xf32> to vector<64x16xf32>
    %58 = arith.subf %54, %57 : vector<64x16xf32>
    %59 = math.exp %58 : vector<64x16xf32>
    %cst_30 = arith.constant dense<0.000000e+00> : vector<64xf32>
    %60 = vector.multi_reduction <add>, %59, %cst_30 [1] : vector<64x16xf32> to vector<64xf32>
    %61 = vector.shape_cast %60 : vector<64xf32> to vector<64x1xf32>
    %62 = tpu.reciprocal %61 {approx = true} : vector<64x1xf32> -> vector<64x1xf32>
    %63 = vector.broadcast %62 : vector<64x1xf32> to vector<64x16xf32>
    %64 = arith.mulf %59, %63 : vector<64x16xf32>
    %65 = arith.truncf %64 : vector<64x16xf32> to vector<64x16xbf16>
    %66 = vector.extract_strided_slice %65 {offsets = [0, 0], sizes = [16, 16], strides = [1, 1]} : vector<64x16xbf16> to vector<16x16xbf16>
    %67 = vector.extract_strided_slice %39 {offsets = [0, 64], sizes = [16, 8], strides = [1, 1]} : vector<16x96xbf16> to vector<16x8xbf16>
    %cst_31 = arith.constant dense<0.000000e+00> : vector<16x8xf32>
    %68 = tpu.matmul %66, %67, %cst_31 {dimension_numbers = #tpu.dot_dimension_numbers<[1], [0], [0], [1], [0, 0, 1, 1], [], []>} : vector<16x16xbf16>, vector<16x8xbf16>, vector<16x8xf32> -> vector<16x8xf32>
    %69 = vector.extract_strided_slice %65 {offsets = [16, 0], sizes = [16, 16], strides = [1, 1]} : vector<64x16xbf16> to vector<16x16xbf16>
    %70 = vector.extract_strided_slice %39 {offsets = [0, 72], sizes = [16, 8], strides = [1, 1]} : vector<16x96xbf16> to vector<16x8xbf16>
    %cst_32 = arith.constant dense<0.000000e+00> : vector<16x8xf32>
    %71 = tpu.matmul %69, %70, %cst_32 {dimension_numbers = #tpu.dot_dimension_numbers<[1], [0], [0], [1], [0, 0, 1, 1], [], []>} : vector<16x16xbf16>, vector<16x8xbf16>, vector<16x8xf32> -> vector<16x8xf32>
    %72 = vector.extract_strided_slice %65 {offsets = [32, 0], sizes = [16, 16], strides = [1, 1]} : vector<64x16xbf16> to vector<16x16xbf16>
    %73 = vector.extract_strided_slice %39 {offsets = [0, 80], sizes = [16, 8], strides = [1, 1]} : vector<16x96xbf16> to vector<16x8xbf16>
    %cst_33 = arith.constant dense<0.000000e+00> : vector<16x8xf32>
    %74 = tpu.matmul %72, %73, %cst_33 {dimension_numbers = #tpu.dot_dimension_numbers<[1], [0], [0], [1], [0, 0, 1, 1], [], []>} : vector<16x16xbf16>, vector<16x8xbf16>, vector<16x8xf32> -> vector<16x8xf32>
    %75 = vector.extract_strided_slice %65 {offsets = [48, 0], sizes = [16, 16], strides = [1, 1]} : vector<64x16xbf16> to vector<16x16xbf16>
    %76 = vector.extract_strided_slice %39 {offsets = [0, 88], sizes = [16, 8], strides = [1, 1]} : vector<16x96xbf16> to vector<16x8xbf16>
    %cst_34 = arith.constant dense<0.000000e+00> : vector<16x8xf32>
    %77 = tpu.matmul %75, %76, %cst_34 {dimension_numbers = #tpu.dot_dimension_numbers<[1], [0], [0], [1], [0, 0, 1, 1], [], []>} : vector<16x16xbf16>, vector<16x8xbf16>, vector<16x8xf32> -> vector<16x8xf32>
    %78 = tpu.concatenate %68, %71, %74, %77 in 1 : vector<16x8xf32>, vector<16x8xf32>, vector<16x8xf32>, vector<16x8xf32> -> vector<16x32xf32>
    %79 = arith.truncf %78 : vector<16x32xf32> to vector<16x32xbf16>
    %c0_35 = arith.constant 0 : index
    %c0_36 = arith.constant 0 : index
    %c0_37 = arith.constant 0 : index
    %80 = vector.load %arg10[%c0_35, %c0_36, %c0_37] : memref<2x32x32xbf16, #tpu.memory_space<vmem>>, vector<1x32x32xbf16>
    %81 = vector.shape_cast %80 : vector<1x32x32xbf16> to vector<32x32xbf16>
    %cst_38 = arith.constant dense<0.000000e+00> : vector<16x32xf32>
    %82 = tpu.matmul %79, %81, %cst_38 {dimension_numbers = #tpu.dot_dimension_numbers<[1], [0], [0], [1], [0, 0, 1, 1], [], []>} : vector<16x32xbf16>, vector<32x32xbf16>, vector<16x32xf32> -> vector<16x32xf32>
    %c0_39 = arith.constant 0 : index
    %c0_40 = arith.constant 0 : index
    %c0_41 = arith.constant 0 : index
    %83 = vector.load %arg11[%c0_39, %c0_40, %c0_41] : memref<2x1x32xf32, #tpu.memory_space<vmem>>, vector<1x1x32xf32>
    %84 = vector.shape_cast %83 : vector<1x1x32xf32> to vector<1x32xf32>
    %85 = vector.broadcast %84 : vector<1x32xf32> to vector<16x32xf32>
    %86 = arith.addf %82, %85 : vector<16x32xf32>
    %87 = arith.addf %4, %86 : vector<16x32xf32>
    %c0_42 = arith.constant 0 : index
    %c0_43 = arith.constant 0 : index
    %c0_44 = arith.constant 0 : index
    %88 = vector.load %arg12[%c0_42, %c0_43, %c0_44] : memref<2x1x32xf32, #tpu.memory_space<vmem>>, vector<1x1x32xf32>
    %89 = vector.shape_cast %88 : vector<1x1x32xf32> to vector<1x32xf32>
    %c0_45 = arith.constant 0 : index
    %c0_46 = arith.constant 0 : index
    %c0_47 = arith.constant 0 : index
    %90 = vector.load %arg13[%c0_45, %c0_46, %c0_47] : memref<2x1x32xf32, #tpu.memory_space<vmem>>, vector<1x1x32xf32>
    %91 = vector.shape_cast %90 : vector<1x1x32xf32> to vector<1x32xf32>
    %cst_48 = arith.constant dense<0.000000e+00> : vector<16xf32>
    %92 = vector.multi_reduction <add>, %87, %cst_48 [1] : vector<16x32xf32> to vector<16xf32>
    %93 = vector.shape_cast %92 : vector<16xf32> to vector<16x1xf32>
    %cst_49 = arith.constant 3.200000e+01 : f32
    %94 = vector.broadcast %cst_49 : f32 to vector<16x1xf32>
    %95 = arith.divf %93, %94 : vector<16x1xf32>
    %96 = vector.broadcast %95 : vector<16x1xf32> to vector<16x32xf32>
    %97 = arith.subf %87, %96 : vector<16x32xf32>
    %98 = arith.mulf %97, %97 : vector<16x32xf32>
    %cst_50 = arith.constant dense<0.000000e+00> : vector<16xf32>
    %99 = vector.multi_reduction <add>, %98, %cst_50 [1] : vector<16x32xf32> to vector<16xf32>
    %100 = vector.shape_cast %99 : vector<16xf32> to vector<16x1xf32>
    %cst_51 = arith.constant 3.200000e+01 : f32
    %101 = vector.broadcast %cst_51 : f32 to vector<16x1xf32>
    %102 = arith.divf %100, %101 : vector<16x1xf32>
    %103 = vector.broadcast %95 : vector<16x1xf32> to vector<16x32xf32>
    %104 = arith.subf %87, %103 : vector<16x32xf32>
    %cst_52 = arith.constant 9.99999996E-13 : f32
    %105 = vector.broadcast %cst_52 : f32 to vector<16x1xf32>
    %106 = arith.addf %102, %105 : vector<16x1xf32>
    %107 = math.rsqrt %106 : vector<16x1xf32>
    %108 = vector.broadcast %107 : vector<16x1xf32> to vector<16x32xf32>
    %109 = arith.mulf %104, %108 : vector<16x32xf32>
    %110 = vector.broadcast %89 : vector<1x32xf32> to vector<16x32xf32>
    %111 = arith.mulf %109, %110 : vector<16x32xf32>
    %112 = vector.broadcast %91 : vector<1x32xf32> to vector<16x32xf32>
    %113 = arith.addf %111, %112 : vector<16x32xf32>
    %114 = arith.truncf %113 : vector<16x32xf32> to vector<16x32xbf16>
    %c0_53 = arith.constant 0 : index
    %c0_54 = arith.constant 0 : index
    %c0_55 = arith.constant 0 : index
    %115 = vector.load %arg14[%c0_53, %c0_54, %c0_55] : memref<2x32x64xbf16, #tpu.memory_space<vmem>>, vector<1x32x64xbf16>
    %116 = vector.shape_cast %115 : vector<1x32x64xbf16> to vector<32x64xbf16>
    %cst_56 = arith.constant dense<0.000000e+00> : vector<16x64xf32>
    %117 = tpu.matmul %114, %116, %cst_56 {dimension_numbers = #tpu.dot_dimension_numbers<[1], [0], [0], [1], [0, 0, 1, 1], [], []>} : vector<16x32xbf16>, vector<32x64xbf16>, vector<16x64xf32> -> vector<16x64xf32>
    %c0_57 = arith.constant 0 : index
    %c0_58 = arith.constant 0 : index
    %c0_59 = arith.constant 0 : index
    %118 = vector.load %arg15[%c0_57, %c0_58, %c0_59] : memref<2x1x64xf32, #tpu.memory_space<vmem>>, vector<1x1x64xf32>
    %119 = vector.shape_cast %118 : vector<1x1x64xf32> to vector<1x64xf32>
    %120 = vector.broadcast %119 : vector<1x64xf32> to vector<16x64xf32>
    %121 = arith.addf %117, %120 : vector<16x64xf32>
    %cst_60 = arith.constant 5.000000e-01 : f32
    %122 = vector.broadcast %cst_60 : f32 to vector<16x64xf32>
    %123 = arith.mulf %122, %121 : vector<16x64xf32>
    %cst_61 = arith.constant 0.707106769 : f32
    %124 = vector.broadcast %cst_61 : f32 to vector<16x64xf32>
    %125 = arith.mulf %121, %124 : vector<16x64xf32>
    %126 = math.erf %125 : vector<16x64xf32>
    %cst_62 = arith.constant 1.000000e+00 : f32
    %127 = vector.broadcast %cst_62 : f32 to vector<16x64xf32>
    %128 = arith.addf %127, %126 : vector<16x64xf32>
    %129 = arith.mulf %123, %128 : vector<16x64xf32>
    %130 = arith.truncf %129 : vector<16x64xf32> to vector<16x64xbf16>
    %c0_63 = arith.constant 0 : index
    %c0_64 = arith.constant 0 : index
    %c0_65 = arith.constant 0 : index
    %131 = vector.load %arg16[%c0_63, %c0_64, %c0_65] : memref<2x64x32xbf16, #tpu.memory_space<vmem>>, vector<1x64x32xbf16>
    %132 = vector.shape_cast %131 : vector<1x64x32xbf16> to vector<64x32xbf16>
    %cst_66 = arith.constant dense<0.000000e+00> : vector<16x32xf32>
    %133 = tpu.matmul %130, %132, %cst_66 {dimension_numbers = #tpu.dot_dimension_numbers<[1], [0], [0], [1], [0, 0, 1, 1], [], []>} : vector<16x64xbf16>, vector<64x32xbf16>, vector<16x32xf32> -> vector<16x32xf32>
    %c0_67 = arith.constant 0 : index
    %c0_68 = arith.constant 0 : index
    %c0_69 = arith.constant 0 : index
    %134 = vector.load %arg17[%c0_67, %c0_68, %c0_69] : memref<2x1x32xf32, #tpu.memory_space<vmem>>, vector<1x1x32xf32>
    %135 = vector.shape_cast %134 : vector<1x1x32xf32> to vector<1x32xf32>
    %136 = vector.broadcast %135 : vector<1x32xf32> to vector<16x32xf32>
    %137 = arith.addf %133, %136 : vector<16x32xf32>
    %138 = arith.addf %87, %137 : vector<16x32xf32>
    %c1 = arith.constant 1 : index
    %c0_70 = arith.constant 0 : index
    %c0_71 = arith.constant 0 : index
    %139 = vector.load %arg6[%c1, %c0_70, %c0_71] : memref<2x1x32xf32, #tpu.memory_space<vmem>>, vector<1x1x32xf32>
    %140 = vector.shape_cast %139 : vector<1x1x32xf32> to vector<1x32xf32>
    %c1_72 = arith.constant 1 : index
    %c0_73 = arith.constant 0 : index
    %c0_74 = arith.constant 0 : index
    %141 = vector.load %arg7[%c1_72, %c0_73, %c0_74] : memref<2x1x32xf32, #tpu.memory_space<vmem>>, vector<1x1x32xf32>
    %142 = vector.shape_cast %141 : vector<1x1x32xf32> to vector<1x32xf32>
    %cst_75 = arith.constant dense<0.000000e+00> : vector<16xf32>
    %143 = vector.multi_reduction <add>, %138, %cst_75 [1] : vector<16x32xf32> to vector<16xf32>
    %144 = vector.shape_cast %143 : vector<16xf32> to vector<16x1xf32>
    %cst_76 = arith.constant 3.200000e+01 : f32
    %145 = vector.broadcast %cst_76 : f32 to vector<16x1xf32>
    %146 = arith.divf %144, %145 : vector<16x1xf32>
    %147 = vector.broadcast %146 : vector<16x1xf32> to vector<16x32xf32>
    %148 = arith.subf %138, %147 : vector<16x32xf32>
    %149 = arith.mulf %148, %148 : vector<16x32xf32>
    %cst_77 = arith.constant dense<0.000000e+00> : vector<16xf32>
    %150 = vector.multi_reduction <add>, %149, %cst_77 [1] : vector<16x32xf32> to vector<16xf32>
    %151 = vector.shape_cast %150 : vector<16xf32> to vector<16x1xf32>
    %cst_78 = arith.constant 3.200000e+01 : f32
    %152 = vector.broadcast %cst_78 : f32 to vector<16x1xf32>
    %153 = arith.divf %151, %152 : vector<16x1xf32>
    %154 = vector.broadcast %146 : vector<16x1xf32> to vector<16x32xf32>
    %155 = arith.subf %138, %154 : vector<16x32xf32>
    %cst_79 = arith.constant 9.99999996E-13 : f32
    %156 = vector.broadcast %cst_79 : f32 to vector<16x1xf32>
    %157 = arith.addf %153, %156 : vector<16x1xf32>
    %158 = math.rsqrt %157 : vector<16x1xf32>
    %159 = vector.broadcast %158 : vector<16x1xf32> to vector<16x32xf32>
    %160 = arith.mulf %155, %159 : vector<16x32xf32>
    %161 = vector.broadcast %140 : vector<1x32xf32> to vector<16x32xf32>
    %162 = arith.mulf %160, %161 : vector<16x32xf32>
    %163 = vector.broadcast %142 : vector<1x32xf32> to vector<16x32xf32>
    %164 = arith.addf %162, %163 : vector<16x32xf32>
    %165 = arith.truncf %164 : vector<16x32xf32> to vector<16x32xbf16>
    %c1_80 = arith.constant 1 : index
    %c0_81 = arith.constant 0 : index
    %c0_82 = arith.constant 0 : index
    %166 = vector.load %arg8[%c1_80, %c0_81, %c0_82] : memref<2x32x96xbf16, #tpu.memory_space<vmem>>, vector<1x32x96xbf16>
    %167 = vector.shape_cast %166 : vector<1x32x96xbf16> to vector<32x96xbf16>
    %cst_83 = arith.constant dense<0.000000e+00> : vector<16x96xf32>
    %168 = tpu.matmul %165, %167, %cst_83 {dimension_numbers = #tpu.dot_dimension_numbers<[1], [0], [0], [1], [0, 0, 1, 1], [], []>} : vector<16x32xbf16>, vector<32x96xbf16>, vector<16x96xf32> -> vector<16x96xf32>
    %c1_84 = arith.constant 1 : index
    %c0_85 = arith.constant 0 : index
    %c0_86 = arith.constant 0 : index
    %169 = vector.load %arg9[%c1_84, %c0_85, %c0_86] : memref<2x1x96xf32, #tpu.memory_space<vmem>>, vector<1x1x96xf32>
    %170 = vector.shape_cast %169 : vector<1x1x96xf32> to vector<1x96xf32>
    %171 = vector.broadcast %170 : vector<1x96xf32> to vector<16x96xf32>
    %172 = arith.addf %168, %171 : vector<16x96xf32>
    %173 = arith.truncf %172 : vector<16x96xf32> to vector<16x96xbf16>
    %174 = vector.extract_strided_slice %173 {offsets = [0, 0], sizes = [16, 8], strides = [1, 1]} : vector<16x96xbf16> to vector<16x8xbf16>
    %175 = vector.extract_strided_slice %173 {offsets = [0, 32], sizes = [16, 8], strides = [1, 1]} : vector<16x96xbf16> to vector<16x8xbf16>
    %cst_87 = arith.constant dense<0.000000e+00> : vector<16x16xf32>
    %176 = tpu.matmul %174, %175, %cst_87 {dimension_numbers = #tpu.dot_dimension_numbers<[1], [1], [0], [0], [0, 0, 1, 0], [], []>} : vector<16x8xbf16>, vector<16x8xbf16>, vector<16x16xf32> -> vector<16x16xf32>
    %177 = vector.extract_strided_slice %173 {offsets = [0, 8], sizes = [16, 8], strides = [1, 1]} : vector<16x96xbf16> to vector<16x8xbf16>
    %178 = vector.extract_strided_slice %173 {offsets = [0, 40], sizes = [16, 8], strides = [1, 1]} : vector<16x96xbf16> to vector<16x8xbf16>
    %cst_88 = arith.constant dense<0.000000e+00> : vector<16x16xf32>
    %179 = tpu.matmul %177, %178, %cst_88 {dimension_numbers = #tpu.dot_dimension_numbers<[1], [1], [0], [0], [0, 0, 1, 0], [], []>} : vector<16x8xbf16>, vector<16x8xbf16>, vector<16x16xf32> -> vector<16x16xf32>
    %180 = vector.extract_strided_slice %173 {offsets = [0, 16], sizes = [16, 8], strides = [1, 1]} : vector<16x96xbf16> to vector<16x8xbf16>
    %181 = vector.extract_strided_slice %173 {offsets = [0, 48], sizes = [16, 8], strides = [1, 1]} : vector<16x96xbf16> to vector<16x8xbf16>
    %cst_89 = arith.constant dense<0.000000e+00> : vector<16x16xf32>
    %182 = tpu.matmul %180, %181, %cst_89 {dimension_numbers = #tpu.dot_dimension_numbers<[1], [1], [0], [0], [0, 0, 1, 0], [], []>} : vector<16x8xbf16>, vector<16x8xbf16>, vector<16x16xf32> -> vector<16x16xf32>
    %183 = vector.extract_strided_slice %173 {offsets = [0, 24], sizes = [16, 8], strides = [1, 1]} : vector<16x96xbf16> to vector<16x8xbf16>
    %184 = vector.extract_strided_slice %173 {offsets = [0, 56], sizes = [16, 8], strides = [1, 1]} : vector<16x96xbf16> to vector<16x8xbf16>
    %cst_90 = arith.constant dense<0.000000e+00> : vector<16x16xf32>
    %185 = tpu.matmul %183, %184, %cst_90 {dimension_numbers = #tpu.dot_dimension_numbers<[1], [1], [0], [0], [0, 0, 1, 0], [], []>} : vector<16x8xbf16>, vector<16x8xbf16>, vector<16x16xf32> -> vector<16x16xf32>
    %186 = tpu.concatenate %176, %179, %182, %185 in 0 : vector<16x16xf32>, vector<16x16xf32>, vector<16x16xf32>, vector<16x16xf32> -> vector<64x16xf32>
    %c0_91 = arith.constant 0 : index
    %c0_92 = arith.constant 0 : index
    %187 = vector.load %arg3[%c0_91, %c0_92] : memref<64x16xf32, #tpu.memory_space<vmem>>, vector<64x16xf32>
    %188 = arith.addf %186, %187 : vector<64x16xf32>
    %cst_93 = arith.constant dense<0xFF800000> : vector<64xf32>
    %189 = vector.multi_reduction <maximumf>, %188, %cst_93 [1] : vector<64x16xf32> to vector<64xf32>
    %190 = vector.shape_cast %189 : vector<64xf32> to vector<64x1xf32>
    %191 = vector.broadcast %190 : vector<64x1xf32> to vector<64x16xf32>
    %192 = arith.subf %188, %191 : vector<64x16xf32>
    %193 = math.exp %192 : vector<64x16xf32>
    %cst_94 = arith.constant dense<0.000000e+00> : vector<64xf32>
    %194 = vector.multi_reduction <add>, %193, %cst_94 [1] : vector<64x16xf32> to vector<64xf32>
    %195 = vector.shape_cast %194 : vector<64xf32> to vector<64x1xf32>
    %196 = tpu.reciprocal %195 {approx = true} : vector<64x1xf32> -> vector<64x1xf32>
    %197 = vector.broadcast %196 : vector<64x1xf32> to vector<64x16xf32>
    %198 = arith.mulf %193, %197 : vector<64x16xf32>
    %199 = arith.truncf %198 : vector<64x16xf32> to vector<64x16xbf16>
    %200 = vector.extract_strided_slice %199 {offsets = [0, 0], sizes = [16, 16], strides = [1, 1]} : vector<64x16xbf16> to vector<16x16xbf16>
    %201 = vector.extract_strided_slice %173 {offsets = [0, 64], sizes = [16, 8], strides = [1, 1]} : vector<16x96xbf16> to vector<16x8xbf16>
    %cst_95 = arith.constant dense<0.000000e+00> : vector<16x8xf32>
    %202 = tpu.matmul %200, %201, %cst_95 {dimension_numbers = #tpu.dot_dimension_numbers<[1], [0], [0], [1], [0, 0, 1, 1], [], []>} : vector<16x16xbf16>, vector<16x8xbf16>, vector<16x8xf32> -> vector<16x8xf32>
    %203 = vector.extract_strided_slice %199 {offsets = [16, 0], sizes = [16, 16], strides = [1, 1]} : vector<64x16xbf16> to vector<16x16xbf16>
    %204 = vector.extract_strided_slice %173 {offsets = [0, 72], sizes = [16, 8], strides = [1, 1]} : vector<16x96xbf16> to vector<16x8xbf16>
    %cst_96 = arith.constant dense<0.000000e+00> : vector<16x8xf32>
    %205 = tpu.matmul %203, %204, %cst_96 {dimension_numbers = #tpu.dot_dimension_numbers<[1], [0], [0], [1], [0, 0, 1, 1], [], []>} : vector<16x16xbf16>, vector<16x8xbf16>, vector<16x8xf32> -> vector<16x8xf32>
    %206 = vector.extract_strided_slice %199 {offsets = [32, 0], sizes = [16, 16], strides = [1, 1]} : vector<64x16xbf16> to vector<16x16xbf16>
    %207 = vector.extract_strided_slice %173 {offsets = [0, 80], sizes = [16, 8], strides = [1, 1]} : vector<16x96xbf16> to vector<16x8xbf16>
    %cst_97 = arith.constant dense<0.000000e+00> : vector<16x8xf32>
    %208 = tpu.matmul %206, %207, %cst_97 {dimension_numbers = #tpu.dot_dimension_numbers<[1], [0], [0], [1], [0, 0, 1, 1], [], []>} : vector<16x16xbf16>, vector<16x8xbf16>, vector<16x8xf32> -> vector<16x8xf32>
    %209 = vector.extract_strided_slice %199 {offsets = [48, 0], sizes = [16, 16], strides = [1, 1]} : vector<64x16xbf16> to vector<16x16xbf16>
    %210 = vector.extract_strided_slice %173 {offsets = [0, 88], sizes = [16, 8], strides = [1, 1]} : vector<16x96xbf16> to vector<16x8xbf16>
    %cst_98 = arith.constant dense<0.000000e+00> : vector<16x8xf32>
    %211 = tpu.matmul %209, %210, %cst_98 {dimension_numbers = #tpu.dot_dimension_numbers<[1], [0], [0], [1], [0, 0, 1, 1], [], []>} : vector<16x16xbf16>, vector<16x8xbf16>, vector<16x8xf32> -> vector<16x8xf32>
    %212 = tpu.concatenate %202, %205, %208, %211 in 1 : vector<16x8xf32>, vector<16x8xf32>, vector<16x8xf32>, vector<16x8xf32> -> vector<16x32xf32>
    %213 = arith.truncf %212 : vector<16x32xf32> to vector<16x32xbf16>
    %c1_99 = arith.constant 1 : index
    %c0_100 = arith.constant 0 : index
    %c0_101 = arith.constant 0 : index
    %214 = vector.load %arg10[%c1_99, %c0_100, %c0_101] : memref<2x32x32xbf16, #tpu.memory_space<vmem>>, vector<1x32x32xbf16>
    %215 = vector.shape_cast %214 : vector<1x32x32xbf16> to vector<32x32xbf16>
    %cst_102 = arith.constant dense<0.000000e+00> : vector<16x32xf32>
    %216 = tpu.matmul %213, %215, %cst_102 {dimension_numbers = #tpu.dot_dimension_numbers<[1], [0], [0], [1], [0, 0, 1, 1], [], []>} : vector<16x32xbf16>, vector<32x32xbf16>, vector<16x32xf32> -> vector<16x32xf32>
    %c1_103 = arith.constant 1 : index
    %c0_104 = arith.constant 0 : index
    %c0_105 = arith.constant 0 : index
    %217 = vector.load %arg11[%c1_103, %c0_104, %c0_105] : memref<2x1x32xf32, #tpu.memory_space<vmem>>, vector<1x1x32xf32>
    %218 = vector.shape_cast %217 : vector<1x1x32xf32> to vector<1x32xf32>
    %219 = vector.broadcast %218 : vector<1x32xf32> to vector<16x32xf32>
    %220 = arith.addf %216, %219 : vector<16x32xf32>
    %221 = arith.addf %138, %220 : vector<16x32xf32>
    %c1_106 = arith.constant 1 : index
    %c0_107 = arith.constant 0 : index
    %c0_108 = arith.constant 0 : index
    %222 = vector.load %arg12[%c1_106, %c0_107, %c0_108] : memref<2x1x32xf32, #tpu.memory_space<vmem>>, vector<1x1x32xf32>
    %223 = vector.shape_cast %222 : vector<1x1x32xf32> to vector<1x32xf32>
    %c1_109 = arith.constant 1 : index
    %c0_110 = arith.constant 0 : index
    %c0_111 = arith.constant 0 : index
    %224 = vector.load %arg13[%c1_109, %c0_110, %c0_111] : memref<2x1x32xf32, #tpu.memory_space<vmem>>, vector<1x1x32xf32>
    %225 = vector.shape_cast %224 : vector<1x1x32xf32> to vector<1x32xf32>
    %cst_112 = arith.constant dense<0.000000e+00> : vector<16xf32>
    %226 = vector.multi_reduction <add>, %221, %cst_112 [1] : vector<16x32xf32> to vector<16xf32>
    %227 = vector.shape_cast %226 : vector<16xf32> to vector<16x1xf32>
    %cst_113 = arith.constant 3.200000e+01 : f32
    %228 = vector.broadcast %cst_113 : f32 to vector<16x1xf32>
    %229 = arith.divf %227, %228 : vector<16x1xf32>
    %230 = vector.broadcast %229 : vector<16x1xf32> to vector<16x32xf32>
    %231 = arith.subf %221, %230 : vector<16x32xf32>
    %232 = arith.mulf %231, %231 : vector<16x32xf32>
    %cst_114 = arith.constant dense<0.000000e+00> : vector<16xf32>
    %233 = vector.multi_reduction <add>, %232, %cst_114 [1] : vector<16x32xf32> to vector<16xf32>
    %234 = vector.shape_cast %233 : vector<16xf32> to vector<16x1xf32>
    %cst_115 = arith.constant 3.200000e+01 : f32
    %235 = vector.broadcast %cst_115 : f32 to vector<16x1xf32>
    %236 = arith.divf %234, %235 : vector<16x1xf32>
    %237 = vector.broadcast %229 : vector<16x1xf32> to vector<16x32xf32>
    %238 = arith.subf %221, %237 : vector<16x32xf32>
    %cst_116 = arith.constant 9.99999996E-13 : f32
    %239 = vector.broadcast %cst_116 : f32 to vector<16x1xf32>
    %240 = arith.addf %236, %239 : vector<16x1xf32>
    %241 = math.rsqrt %240 : vector<16x1xf32>
    %242 = vector.broadcast %241 : vector<16x1xf32> to vector<16x32xf32>
    %243 = arith.mulf %238, %242 : vector<16x32xf32>
    %244 = vector.broadcast %223 : vector<1x32xf32> to vector<16x32xf32>
    %245 = arith.mulf %243, %244 : vector<16x32xf32>
    %246 = vector.broadcast %225 : vector<1x32xf32> to vector<16x32xf32>
    %247 = arith.addf %245, %246 : vector<16x32xf32>
    %248 = arith.truncf %247 : vector<16x32xf32> to vector<16x32xbf16>
    %c1_117 = arith.constant 1 : index
    %c0_118 = arith.constant 0 : index
    %c0_119 = arith.constant 0 : index
    %249 = vector.load %arg14[%c1_117, %c0_118, %c0_119] : memref<2x32x64xbf16, #tpu.memory_space<vmem>>, vector<1x32x64xbf16>
    %250 = vector.shape_cast %249 : vector<1x32x64xbf16> to vector<32x64xbf16>
    %cst_120 = arith.constant dense<0.000000e+00> : vector<16x64xf32>
    %251 = tpu.matmul %248, %250, %cst_120 {dimension_numbers = #tpu.dot_dimension_numbers<[1], [0], [0], [1], [0, 0, 1, 1], [], []>} : vector<16x32xbf16>, vector<32x64xbf16>, vector<16x64xf32> -> vector<16x64xf32>
    %c1_121 = arith.constant 1 : index
    %c0_122 = arith.constant 0 : index
    %c0_123 = arith.constant 0 : index
    %252 = vector.load %arg15[%c1_121, %c0_122, %c0_123] : memref<2x1x64xf32, #tpu.memory_space<vmem>>, vector<1x1x64xf32>
    %253 = vector.shape_cast %252 : vector<1x1x64xf32> to vector<1x64xf32>
    %254 = vector.broadcast %253 : vector<1x64xf32> to vector<16x64xf32>
    %255 = arith.addf %251, %254 : vector<16x64xf32>
    %cst_124 = arith.constant 5.000000e-01 : f32
    %256 = vector.broadcast %cst_124 : f32 to vector<16x64xf32>
    %257 = arith.mulf %256, %255 : vector<16x64xf32>
    %cst_125 = arith.constant 0.707106769 : f32
    %258 = vector.broadcast %cst_125 : f32 to vector<16x64xf32>
    %259 = arith.mulf %255, %258 : vector<16x64xf32>
    %260 = math.erf %259 : vector<16x64xf32>
    %cst_126 = arith.constant 1.000000e+00 : f32
    %261 = vector.broadcast %cst_126 : f32 to vector<16x64xf32>
    %262 = arith.addf %261, %260 : vector<16x64xf32>
    %263 = arith.mulf %257, %262 : vector<16x64xf32>
    %264 = arith.truncf %263 : vector<16x64xf32> to vector<16x64xbf16>
    %c1_127 = arith.constant 1 : index
    %c0_128 = arith.constant 0 : index
    %c0_129 = arith.constant 0 : index
    %265 = vector.load %arg16[%c1_127, %c0_128, %c0_129] : memref<2x64x32xbf16, #tpu.memory_space<vmem>>, vector<1x64x32xbf16>
    %266 = vector.shape_cast %265 : vector<1x64x32xbf16> to vector<64x32xbf16>
    %cst_130 = arith.constant dense<0.000000e+00> : vector<16x32xf32>
    %267 = tpu.matmul %264, %266, %cst_130 {dimension_numbers = #tpu.dot_dimension_numbers<[1], [0], [0], [1], [0, 0, 1, 1], [], []>} : vector<16x64xbf16>, vector<64x32xbf16>, vector<16x32xf32> -> vector<16x32xf32>
    %c1_131 = arith.constant 1 : index
    %c0_132 = arith.constant 0 : index
    %c0_133 = arith.constant 0 : index
    %268 = vector.load %arg17[%c1_131, %c0_132, %c0_133] : memref<2x1x32xf32, #tpu.memory_space<vmem>>, vector<1x1x32xf32>
    %269 = vector.shape_cast %268 : vector<1x1x32xf32> to vector<1x32xf32>
    %270 = vector.broadcast %269 : vector<1x32xf32> to vector<16x32xf32>
    %271 = arith.addf %267, %270 : vector<16x32xf32>
    %272 = arith.addf %221, %271 : vector<16x32xf32>
    %c0_134 = arith.constant 0 : index
    %c0_135 = arith.constant 0 : index
    %273 = vector.load %arg18[%c0_134, %c0_135] : memref<1x32xf32, #tpu.memory_space<vmem>>, vector<1x32xf32>
    %c0_136 = arith.constant 0 : index
    %c0_137 = arith.constant 0 : index
    %274 = vector.load %arg19[%c0_136, %c0_137] : memref<1x32xf32, #tpu.memory_space<vmem>>, vector<1x32xf32>
    %cst_138 = arith.constant dense<0.000000e+00> : vector<16xf32>
    %275 = vector.multi_reduction <add>, %272, %cst_138 [1] : vector<16x32xf32> to vector<16xf32>
    %276 = vector.shape_cast %275 : vector<16xf32> to vector<16x1xf32>
    %cst_139 = arith.constant 3.200000e+01 : f32
    %277 = vector.broadcast %cst_139 : f32 to vector<16x1xf32>
    %278 = arith.divf %276, %277 : vector<16x1xf32>
    %279 = vector.broadcast %278 : vector<16x1xf32> to vector<16x32xf32>
    %280 = arith.subf %272, %279 : vector<16x32xf32>
    %281 = arith.mulf %280, %280 : vector<16x32xf32>
    %cst_140 = arith.constant dense<0.000000e+00> : vector<16xf32>
    %282 = vector.multi_reduction <add>, %281, %cst_140 [1] : vector<16x32xf32> to vector<16xf32>
    %283 = vector.shape_cast %282 : vector<16xf32> to vector<16x1xf32>
    %cst_141 = arith.constant 3.200000e+01 : f32
    %284 = vector.broadcast %cst_141 : f32 to vector<16x1xf32>
    %285 = arith.divf %283, %284 : vector<16x1xf32>
    %286 = vector.broadcast %278 : vector<16x1xf32> to vector<16x32xf32>
    %287 = arith.subf %272, %286 : vector<16x32xf32>
    %cst_142 = arith.constant 9.99999996E-13 : f32
    %288 = vector.broadcast %cst_142 : f32 to vector<16x1xf32>
    %289 = arith.addf %285, %288 : vector<16x1xf32>
    %290 = math.rsqrt %289 : vector<16x1xf32>
    %291 = vector.broadcast %290 : vector<16x1xf32> to vector<16x32xf32>
    %292 = arith.mulf %287, %291 : vector<16x32xf32>
    %293 = vector.broadcast %273 : vector<1x32xf32> to vector<16x32xf32>
    %294 = arith.mulf %292, %293 : vector<16x32xf32>
    %295 = vector.broadcast %274 : vector<1x32xf32> to vector<16x32xf32>
    %296 = arith.addf %294, %295 : vector<16x32xf32>
    %c0_143 = arith.constant 0 : index
    %c0_144 = arith.constant 0 : index
    %297 = vector.load %arg4[%c0_143, %c0_144] : memref<2x16xf32, #tpu.memory_space<vmem>>, vector<2x16xf32>
    %298 = arith.truncf %297 : vector<2x16xf32> to vector<2x16xbf16>
    %299 = arith.truncf %296 : vector<16x32xf32> to vector<16x32xbf16>
    %cst_145 = arith.constant dense<0.000000e+00> : vector<2x32xf32>
    %300 = tpu.matmul %298, %299, %cst_145 {dimension_numbers = #tpu.dot_dimension_numbers<[1], [0], [0], [1], [0, 0, 1, 1], [], []>} : vector<2x16xbf16>, vector<16x32xbf16>, vector<2x32xf32> -> vector<2x32xf32>
    %301 = arith.truncf %300 : vector<2x32xf32> to vector<2x32xbf16>
    %c0_146 = arith.constant 0 : index
    %c0_147 = arith.constant 0 : index
    %302 = vector.load %arg20[%c0_146, %c0_147] : memref<32x1xbf16, #tpu.memory_space<vmem>>, vector<32x1xbf16>
    %cst_148 = arith.constant dense<0.000000e+00> : vector<2x1xf32>
    %303 = tpu.matmul %301, %302, %cst_148 {dimension_numbers = #tpu.dot_dimension_numbers<[1], [0], [0], [1], [0, 0, 1, 1], [], []>} : vector<2x32xbf16>, vector<32x1xbf16>, vector<2x1xf32> -> vector<2x1xf32>
    %c0_149 = arith.constant 0 : index
    %c0_150 = arith.constant 0 : index
    %304 = vector.load %arg21[%c0_149, %c0_150] : memref<1x1xf32, #tpu.memory_space<vmem>>, vector<1x1xf32>
    %305 = vector.broadcast %304 : vector<1x1xf32> to vector<2x1xf32>
    %306 = arith.addf %303, %305 : vector<2x1xf32>
    %307 = arith.negf %306 : vector<2x1xf32>
    %308 = math.exp %307 : vector<2x1xf32>
    %cst_151 = arith.constant 1.000000e+00 : f32
    %309 = vector.broadcast %cst_151 : f32 to vector<2x1xf32>
    %310 = arith.addf %309, %308 : vector<2x1xf32>
    %311 = arith.divf %309, %310 : vector<2x1xf32>
    %c0_152 = arith.constant 0 : index
    %c0_153 = arith.constant 0 : index
    %312 = vector.load %arg22[%c0_152, %c0_153] : memref<2x1xf32, #tpu.memory_space<vmem>>, vector<2x1xf32>
    tpu.vector_store %arg22[%c0_152, %c0_153], %311 {strides = array<i32>} : memref<2x1xf32, #tpu.memory_space<vmem>>, vector<2x1xf32>,
    return
  }
  func.func @transform_0(%arg0: i32) -> (i32, i32) {
    %c0_i32 = arith.constant 0 : i32
    %c0_i32_0 = arith.constant 0 : i32
    %c0_i32_1 = arith.constant 0 : i32
    return %c0_i32, %c0_i32_0 : i32, i32
  }
  func.func @transform_1(%arg0: i32) -> (i32, i32) {
    %c0_i32 = arith.constant 0 : i32
    %c0_i32_0 = arith.constant 0 : i32
    %c0_i32_1 = arith.constant 0 : i32
    return %c0_i32, %c0_i32_0 : i32, i32
  }
  func.func @transform_2(%arg0: i32) -> (i32, i32) {
    %c0_i32 = arith.constant 0 : i32
    %c0_i32_0 = arith.constant 0 : i32
    %c0_i32_1 = arith.constant 0 : i32
    return %c0_i32, %c0_i32_0 : i32, i32
  }
  func.func @transform_3(%arg0: i32) -> (i32, i32) {
    %c0_i32 = arith.constant 0 : i32
    %c0_i32_0 = arith.constant 0 : i32
    %c0_i32_1 = arith.constant 0 : i32
    return %c0_i32, %c0_i32_0 : i32, i32
  }
  func.func @transform_4(%arg0: i32) -> (i32, i32) {
    %c0_i32 = arith.constant 0 : i32
    %c0_i32_0 = arith.constant 0 : i32
    %c0_i32_1 = arith.constant 0 : i32
    return %c0_i32, %c0_i32_0 : i32, i32
  }
  func.func @transform_5(%arg0: i32) -> (i32, i32, i32) {
    %c0_i32 = arith.constant 0 : i32
    %c0_i32_0 = arith.constant 0 : i32
    %c0_i32_1 = arith.constant 0 : i32
    %c0_i32_2 = arith.constant 0 : i32
    return %c0_i32, %c0_i32_0, %c0_i32_1 : i32, i32, i32
  }
  func.func @transform_6(%arg0: i32) -> (i32, i32, i32) {
    %c0_i32 = arith.constant 0 : i32
    %c0_i32_0 = arith.constant 0 : i32
    %c0_i32_1 = arith.constant 0 : i32
    %c0_i32_2 = arith.constant 0 : i32
    return %c0_i32, %c0_i32_0, %c0_i32_1 : i32, i32, i32
  }
  func.func @transform_7(%arg0: i32) -> (i32, i32, i32) {
    %c0_i32 = arith.constant 0 : i32
    %c0_i32_0 = arith.constant 0 : i32
    %c0_i32_1 = arith.constant 0 : i32
    %c0_i32_2 = arith.constant 0 : i32
    return %c0_i32, %c0_i32_0, %c0_i32_1 : i32, i32, i32
  }
  func.func @transform_8(%arg0: i32) -> (i32, i32, i32) {
    %c0_i32 = arith.constant 0 : i32
    %c0_i32_0 = arith.constant 0 : i32
    %c0_i32_1 = arith.constant 0 : i32
    %c0_i32_2 = arith.constant 0 : i32
    return %c0_i32, %c0_i32_0, %c0_i32_1 : i32, i32, i32
  }
  func.func @transform_9(%arg0: i32) -> (i32, i32, i32) {
    %c0_i32 = arith.constant 0 : i32
    %c0_i32_0 = arith.constant 0 : i32
    %c0_i32_1 = arith.constant 0 : i32
    %c0_i32_2 = arith.constant 0 : i32
    return %c0_i32, %c0_i32_0, %c0_i32_1 : i32, i32, i32
  }
  func.func @transform_10(%arg0: i32) -> (i32, i32, i32) {
    %c0_i32 = arith.constant 0 : i32
    %c0_i32_0 = arith.constant 0 : i32
    %c0_i32_1 = arith.constant 0 : i32
    %c0_i32_2 = arith.constant 0 : i32
    return %c0_i32, %c0_i32_0, %c0_i32_1 : i32, i32, i32
  }
  func.func @transform_11(%arg0: i32) -> (i32, i32, i32) {
    %c0_i32 = arith.constant 0 : i32
    %c0_i32_0 = arith.constant 0 : i32
    %c0_i32_1 = arith.constant 0 : i32
    %c0_i32_2 = arith.constant 0 : i32
    return %c0_i32, %c0_i32_0, %c0_i32_1 : i32, i32, i32
  }
  func.func @transform_12(%arg0: i32) -> (i32, i32, i32) {
    %c0_i32 = arith.constant 0 : i32
    %c0_i32_0 = arith.constant 0 : i32
    %c0_i32_1 = arith.constant 0 : i32
    %c0_i32_2 = arith.constant 0 : i32
    return %c0_i32, %c0_i32_0, %c0_i32_1 : i32, i32, i32
  }
  func.func @transform_13(%arg0: i32) -> (i32, i32, i32) {
    %c0_i32 = arith.constant 0 : i32
    %c0_i32_0 = arith.constant 0 : i32
    %c0_i32_1 = arith.constant 0 : i32
    %c0_i32_2 = arith.constant 0 : i32
    return %c0_i32, %c0_i32_0, %c0_i32_1 : i32, i32, i32
  }
  func.func @transform_14(%arg0: i32) -> (i32, i32, i32) {
    %c0_i32 = arith.constant 0 : i32
    %c0_i32_0 = arith.constant 0 : i32
    %c0_i32_1 = arith.constant 0 : i32
    %c0_i32_2 = arith.constant 0 : i32
    return %c0_i32, %c0_i32_0, %c0_i32_1 : i32, i32, i32
  }
  func.func @transform_15(%arg0: i32) -> (i32, i32, i32) {
    %c0_i32 = arith.constant 0 : i32
    %c0_i32_0 = arith.constant 0 : i32
    %c0_i32_1 = arith.constant 0 : i32
    %c0_i32_2 = arith.constant 0 : i32
    return %c0_i32, %c0_i32_0, %c0_i32_1 : i32, i32, i32
  }
  func.func @transform_16(%arg0: i32) -> (i32, i32, i32) {
    %c0_i32 = arith.constant 0 : i32
    %c0_i32_0 = arith.constant 0 : i32
    %c0_i32_1 = arith.constant 0 : i32
    %c0_i32_2 = arith.constant 0 : i32
    return %c0_i32, %c0_i32_0, %c0_i32_1 : i32, i32, i32
  }
  func.func @transform_17(%arg0: i32) -> (i32, i32) {
    %c0_i32 = arith.constant 0 : i32
    %c0_i32_0 = arith.constant 0 : i32
    %c0_i32_1 = arith.constant 0 : i32
    return %c0_i32, %c0_i32_0 : i32, i32
  }
  func.func @transform_18(%arg0: i32) -> (i32, i32) {
    %c0_i32 = arith.constant 0 : i32
    %c0_i32_0 = arith.constant 0 : i32
    %c0_i32_1 = arith.constant 0 : i32
    return %c0_i32, %c0_i32_0 : i32, i32
  }
  func.func @transform_19(%arg0: i32) -> (i32, i32) {
    %c0_i32 = arith.constant 0 : i32
    %c0_i32_0 = arith.constant 0 : i32
    %c0_i32_1 = arith.constant 0 : i32
    return %c0_i32, %c0_i32_0 : i32, i32
  }
  func.func @transform_20(%arg0: i32) -> (i32, i32) {
    %c0_i32 = arith.constant 0 : i32
    %c0_i32_0 = arith.constant 0 : i32
    %c0_i32_1 = arith.constant 0 : i32
    return %c0_i32, %c0_i32_0 : i32, i32
  }
  func.func @transform_21(%arg0: i32) -> (i32, i32) {
    %c0_i32 = arith.constant 0 : i32
    %c0_i32_0 = arith.constant 0 : i32
    %c0_i32_1 = arith.constant 0 : i32
    return %c0_i32, %c0_i32_0 : i32, i32
  }
}

</mosaic_0001>

<bundles_post_ra>
// kernel: forward.1
= control target key start
LH: loop header
LB: loop body
LE: loop exit
PB: predicated region body
PF: predicated region fallthrough
CT: control target
= control target key end

     0   :  { %v2781_v0 = vmov 0   ;;  %vm180_vm0 = vcmask 523264   ;;  %vm227_vm1 = vcmask 261120   ;;  %v2782_v36 = vmov 0.0   ;;  %s2784_s29 = smov 88   ;;  %s2788_s30 = smov 80   ;;  %s3431_s4 = inlined_call_operand.vmem [shape: bf16[192,32], index: 4, kind: input, shape index: {}]   ;;  %s3432_s0 = inlined_call_operand.vmem [shape: bf16[16,192], index: 0, kind: input, shape index: {}]   ;;  %s3433_s1 = inlined_call_operand.vmem [shape: f32[16,32], index: 1, kind: input, shape index: {}]   ;;  %s3434_s7 = inlined_call_operand.vmem [shape: bf16[2,32,96], index: 7, kind: input, shape index: {}]   ;;  %s3435_s5 = inlined_call_operand.vmem [shape: f32[2,1,32], index: 5, kind: input, shape index: {}]   ;;  %s3436_s6 = inlined_call_operand.vmem [shape: f32[2,1,32], index: 6, kind: input, shape index: {}]   ;;  %s3437_s8 = inlined_call_operand.vmem [shape: f32[2,1,96], index: 8, kind: input, shape index: {}]   ;;  %s3438_s2 = inlined_call_operand.vmem [shape: f32[64,16], index: 2, kind: input, shape index: {}]   ;;  %s3439_s9 = inlined_call_operand.vmem [shape: bf16[2,32,32], index: 9, kind: input, shape index: {}]   ;;  %s3440_s10 = inlined_call_operand.vmem [shape: f32[2,1,32], index: 10, kind: input, shape index: {}]   ;;  %s3441_s13 = inlined_call_operand.vmem [shape: bf16[2,32,64], index: 13, kind: input, shape index: {}]   ;;  %s3442_s11 = inlined_call_operand.vmem [shape: f32[2,1,32], index: 11, kind: input, shape index: {}]   ;;  %s3443_s12 = inlined_call_operand.vmem [shape: f32[2,1,32], index: 12, kind: input, shape index: {}]   ;;  %s3444_s15 = inlined_call_operand.vmem [shape: bf16[2,64,32], index: 15, kind: input, shape index: {}]   ;;  %s3445_s14 = inlined_call_operand.vmem [shape: f32[2,1,64], index: 14, kind: input, shape index: {}]   ;;  %s3446_s16 = inlined_call_operand.vmem [shape: f32[2,1,32], index: 16, kind: input, shape index: {}]   ;;  %s3447_s19 = inlined_call_operand.vmem [shape: bf16[32,1], index: 19, kind: input, shape index: {}]   ;;  %s3448_s17 = inlined_call_operand.vmem [shape: f32[1,32], index: 17, kind: input, shape index: {}]   ;;  %s3449_s18 = inlined_call_operand.vmem [shape: f32[1,32], index: 18, kind: input, shape index: {}]   ;;  %s3450_s3 = inlined_call_operand.vmem [shape: f32[2,16], index: 3, kind: input, shape index: {}]   ;;  %s3451_s20 = inlined_call_operand.<no memory space> [shape: f32[1,1], index: 20, kind: input, shape index: {}]   ;;  %s3452_s21 = inlined_call_operand.vmem [shape: f32[2,1], index: 21, kind: output, shape index: {}]  }
   0x1   :  { %3467 = sst [smem:[#allocation3_spill]] %s3431_s4  ;;  %184 = vmatprep.subr.bf16.mxu0 %v2781_v0  ;;  %2419 = vmatprep.subr.bf16.mxu1 %v2782_v36  ;;  %vm2783_vm2 = vmmov 0   ;;  %v2260_v55 = vld [vmem:[%s3437_s8] ss:$0 sm:$0xff]  ;;  %s2785_s4 = smov 96   ;;  %vm343_vm3 = vcmask 64512  }
   0x2   :  { %3468 = sst [smem:[#allocation4_spill]] %s3432_s0  ;;  %s3473_s26 = sld [smem:[#allocation3_spill]]  ;;  %2423 = vmatprep.mubr.msk.bf16.mxu1 %vm2783_vm2, %v2782_v36  ;;  %vm560_vm4 = vcmask 130048   ;;  %vm869_vm5 = vcmask 195584   ;;  %vm2237_vm6 = vcmask 1024  }
   0x3   :  { %3469 = sst [smem:[#allocation5_spill]] %s3433_s1  ;;  %s3474_s22 = sld [smem:[#allocation4_spill]] }
   0x4   :  { %3470 = sst [smem:[#allocation6_spill]] %s3434_s7  ;;  %s3475_s28 = sld [smem:[#allocation5_spill]] }
   0x5   :  { %3471 = sst [smem:[#allocation7_spill]] %s3435_s5  ;;  %s3476_s5 = sld [smem:[#allocation6_spill]] }
   0x6   :  { %3472 = sst [smem:[#allocation8_spill]] %s3436_s6  ;;  %s3477_s24 = sld [smem:[#allocation7_spill]] }
   0x7   :  { %s3478_s27 = sld [smem:[#allocation8_spill]]  ;;  %s2789_s6 = smov 104  }
   0x8   :  { %v2648_v1 = vld [vmem:[%s3473_s26] sm:$0xff]   ;;  %v2649_v2 = vld [vmem:[%s3473_s26 + $0x8] sm:$0xff]   ;;  %v2650_v3 = vld [vmem:[%s3473_s26 + $0x10] sm:$0xff]   ;;  %s2790_s23 = smov 72   ;;  %s3465_s1 = smov 64  }
   0x9   :  { %185 = vmatpush1.bf16.msra.mxu0 %v2648_v1  ;;  %v2651_v4 = vld [vmem:[%s3473_s26 + $0x18] sm:$0xff]   ;;  %v2662_v5 = vld [vmem:[%s3474_s22 + $0x4] ss:$8 sps:$4 sm:$0xff]   ;;  %v2654_v8 = vld [vmem:[%s3473_s26 + $0x30] sm:$0xff]   ;;  %s3460_s25 = smov 40   ;;  %s3459_s7 = smov 56  }
   0xa   :  { %186 = vmatprep.subr.bf16.mxu0 %v2781_v0  ;;  %v2652_v6 = vld [vmem:[%s3473_s26 + $0x20] sm:$0xff]   ;;  %2257 = vmatprep.mubr.msk.bf16.mxu0 %vm180_vm0, %v2662_v5  ;;  %v2653_v7 = vld [vmem:[%s3473_s26 + $0x28] sm:$0xff]   ;;  %v2655_v9 = vld [vmem:[%s3473_s26 + $0x38] sm:$0xff]   ;;  %s3462_s0 = smov 16  }
   0xb   :  { %v2656_v10 = vld [vmem:[%s3473_s26 + $0x40] sm:$0xff]   ;;  %v2657_v11 = vld [vmem:[%s3473_s26 + $0x48] sm:$0xff]   ;;  %v2658_v12 = vld [vmem:[%s3473_s26 + $0x50] sm:$0xff]  }
   0xc   :  { %v2659_v13 = vld [vmem:[%s3473_s26 + $0x58] sm:$0xff]   ;;  %v2660_v14 = vld [vmem:[%s3474_s22] ss:$8 sps:$4 sm:$0xff]   ;;  %s2786_s26 = smov 120   ;;  %s3466_s22 = smov 112  }
   0xd   :  { %187 = vmatpush1.bf16.msra.mxu0 %v2649_v2  ;;  %v97_v15 = vld [vmem:[%s3475_s28] sm:$0xff]  ;;  %v98_v17 = vld [vmem:[%s3475_s28 + $0x8] sm:$0xff]  ;;  %s3463_s28 = smov 8  }
   0xe   :  { %188 = vmatprep.subr.bf16.mxu0 %v2781_v0  ;;  %v2663_v35 = vld [vmem:[%s3476_s5] sm:$0xff]   ;;  %v2664_v37 = vld [vmem:[%s3476_s5 + $0x8] sm:$0xff]  }
   0xf   :  { %2420 = vmatpush3.bf16.msra.mxu1 %v2663_v35  ;;  %v2258_v46 = vld [vmem:[%s3477_s24] ss:$0 sm:$0xff] }
  0x10   :  { %2421 = vmatprep.subr.bf16.mxu1 %v2782_v36  ;;  %v2259_v50 = vld [vmem:[%s3478_s27] ss:$0 sm:$0xff] }
  0x11   :  { %189 = vmatpush1.bf16.msra.mxu0 %v2650_v3 }
  0x12   :  { %190 = vmatprep.subr.bf16.mxu0 %v2781_v0 }
  0x13   :  { %2422 = vmatpush3.bf16.msra.mxu1 %v2664_v37 }
  0x14   :  { %2427 = vmatprep.subr.bf16.mxu1 %v2782_v36 }
  0x15   :  { %191 = vmatpush1.bf16.msra.mxu0 %v2651_v4 }
  0x16   :  { %192 = vmatprep.subr.bf16.mxu0 %v2781_v0 }
  0x19   :  { %193 = vmatpush1.bf16.msra.mxu0 %v2652_v6 }
  0x1a   :  { %194 = vmatprep.subr.bf16.mxu0 %v2781_v0 }
  0x1d   :  { %195 = vmatpush1.bf16.msra.mxu0 %v2653_v7 }
  0x1e   :  { %196 = vmatprep.subr.bf16.mxu0 %v2781_v0 }
  0x21   :  { %197 = vmatpush1.bf16.msra.mxu0 %v2654_v8 }
  0x22   :  { %198 = vmatprep.subr.bf16.mxu0 %v2781_v0 }
  0x25   :  { %199 = vmatpush1.bf16.msra.mxu0 %v2655_v9 }
  0x26   :  { %200 = vmatprep.subr.bf16.mxu0 %v2781_v0 }
  0x29   :  { %201 = vmatpush1.bf16.msra.mxu0 %v2656_v10  ;;  %v3035_v10 = vld [vmem:[%s3438_s2] sm:$0xff] }
  0x2a   :  { %202 = vmatprep.subr.bf16.mxu0 %v2781_v0 }
  0x2d   :  { %203 = vmatpush1.bf16.msra.mxu0 %v2657_v11 }
  0x2e   :  { %204 = vmatprep.subr.bf16.mxu0 %v2781_v0 }
  0x31   :  { %205 = vmatpush1.bf16.msra.mxu0 %v2658_v12  ;;  %v3040_v12 = vld [vmem:[%s3438_s2 + $0x8] sm:$0xff] }
  0x32   :  { %206 = vmatprep.subr.bf16.mxu0 %v2781_v0 }
  0x35   :  { %207 = vmatpush1.bf16.msra.mxu0 %v2659_v13 }
  0x36   :  { %2457 = vmatprep.subr.bf16.mxu0 %v2782_v36 }
  0x38   :  { %217 = vmatmul.mubr.bf16.vlgmr.msra.gmra.mrb[0].mxu0 %v2660_v14 }
  0x39   :  { %2459 = vmatprep.mubr.msk.bf16.mxu0 %vm2783_vm2, %v2782_v36 }
 0x10b   :  { %v218_v16 = vpop.f32.mrb[0].mxu0 }
 0x10c   :  { %v2957_v18 = vadd.f32 %v218_v16, %v97_v15  ;;  %v220_v19 = vpop.f32.mrb[1].mxu0 }
 0x10d   :  { %v221_v20 = vpop.f32.mrb[2].mxu0 }
 0x10e   :  { %v2959_v21 = vadd.f32 %v221_v20, %v98_v17  ;;  %v223_v22 = vpop.f32.mrb[3].mxu0  ;;  %v228_v23 = vsel %vm227_vm1, %v2957_v18, 0.0 }
 0x10f   :  { %229 = vadd.xlane.f32.xlu0 %v228_v23  ;;  %v3049_v22 = vld [vmem:[%s3438_s2 + $0x10] sm:$0xff] }
 0x110   :  { %v231_v24 = vsel %vm227_vm1, %v2959_v21, 0.0 }
 0x113   :  { %232 = vadd.xlane.f32.xlu0 %v231_v24  ;;  %v3054_v24 = vld [vmem:[%s3438_s2 + $0x18] sm:$0xff] }
 0x19c   :  { %v230_v25 = vpop.xlane.xlu0 %229 }
 0x19d   :  { %v235_v26 = vmul.f32 0.03125, %v230_v25 }
 0x19f   :  { %v237_v27 = vsub.f32 %v2957_v18, %v235_v26 }
 0x1a0   :  { %v233_v28 = vpop.xlane.xlu0 %232 }
 0x1a1   :  { %v236_v29 = vmul.f32 0.03125, %v233_v28  ;;  %v239_v30 = vmul.f32 %v237_v27, %v237_v27 }
 0x1a3   :  { %v238_v31 = vsub.f32 %v2959_v21, %v236_v29  ;;  %v241_v32 = vsel %vm227_vm1, %v239_v30, 0.0 }
 0x1a4   :  { %242 = vadd.xlane.f32.xlu1 %v241_v32 }
 0x1a5   :  { %v240_v33 = vmul.f32 %v238_v31, %v238_v31 }
 0x1a7   :  { %v244_v34 = vsel %vm227_vm1, %v240_v33, 0.0 }
 0x1a8   :  { %245 = vadd.xlane.f32.xlu1 %v244_v34  ;;  %v3068_v34 = vld [vmem:[%s3438_s2 + $0x28] sm:$0xff] }
 0x231   :  { %v243_v38 = vpop.xlane.xlu1 %242 }
 0x232   :  { %v247_v39 = vmul.f32 0.03125, %v243_v38 }
 0x234   :  { %v249_v40 = vadd.f32 1e-12, %v247_v39 }
 0x235   :  { %v246_v41 = vpop.xlane.xlu1 %245 }
 0x236   :  { %2685 = vrsqrt.f32 %v249_v40  ;;  %v248_v42 = vmul.f32 0.03125, %v246_v41 }
 0x238   :  { %v250_v43 = vadd.f32 1e-12, %v248_v42 }
 0x23a   :  { %2687 = vrsqrt.f32 %v250_v43  ;;  %v3077_v43 = vld [vmem:[%s3438_s2 + $0x30] sm:$0xff] }
 0x240   :  { %v2686_v44 = vpop.eup %2685 }
 0x241   :  { %v253_v45 = vmul.f32 %v2686_v44, %v237_v27 }
 0x243   :  { %v261_v49 = vmul.f32 %v2258_v46, %v253_v45  ;;  %v3082_v45 = vld [vmem:[%s3438_s2 + $0x38] sm:$0xff] }
 0x244   :  { %v2688_v47 = vpop.eup %2687 }
 0x245   :  { %v254_v48 = vmul.f32 %v2688_v47, %v238_v31  ;;  %v269_v52 = vadd.f32 %v2259_v50, %v261_v49  ;;  %v3062_v31 = vld [vmem:[%s3438_s2 + $0x20] sm:$0xff]  ;;  %s3464_s2 = smov 48  }
 0x247   :  { %v262_v51 = vmul.f32 %v2258_v46, %v254_v48 }
 0x249   :  { %v270_v53 = vadd.f32 %v2259_v50, %v262_v51 }
 0x24b   :  { %v271_v54 = vpack.c.bf16 %v270_v53, %v269_v52 }
 0x24d   :  { %2424 = vmatmul.mubr.msk.bf16.vlgmr.msra.gmra.mrb[0].mxu1 %vm227_vm1, %v271_v54 }
 0x24e   :  { %2429 = vmatprep.mubr.msk.bf16.mxu1 %vm2783_vm2, %v2782_v36 }
 0x320   :  { %v332_v56 = vpop.f32.mrb[0].mxu1 }
 0x321   :  { %v2425_v57 = vpop.f32.mrb[1].mxu1  ;;  %v333_v59 = vadd.f32 %v2260_v55, %v332_v56 }
 0x322   :  { %v335_v58 = vpop.f32.mrb[2].mxu1 }
 0x323   :  { %v336_v60 = vadd.f32 %v2260_v55, %v335_v58  ;;  %v2426_v61 = vpop.f32.mrb[3].mxu1 }
 0x325   :  { %v2995_v62 = vpack.c.bf16 %v336_v60, %v333_v59 }
 0x327   :  { %393 = vrot.lane.b32.xlu1 %v2995_v62, %s2784_s29  ;;  %341 = vrot.lane.b32.xlu0 %v2995_v62, %s2785_s4 }
 0x32b   :  { %391 = vrot.lane.b32.xlu1 %v2995_v62, %s2786_s26  ;;  %442 = vrot.lane.b32.xlu0 %v2995_v62, %s3466_s22 }
 0x32f   :  { %444 = vrot.lane.b32.xlu1 %v2995_v62, %s2788_s30  ;;  %493 = vrot.lane.b32.xlu0 %v2995_v62, %s2789_s6 }
 0x333   :  { %495 = vrot.lane.b32.xlu1 %v2995_v62, %s2790_s23 }
 0x399   :  { %v342_v63 = vpop.permute.xlu0 %341  ;;  %v394_v1 = vpop.permute.xlu1 %393 }
 0x39a   :  { %v348_v0 = vsel %vm343_vm3, %v342_v63, 0  ;;  %v399_v3 = vsel %vm343_vm3, %v394_v1, 0 }
 0x39b   :  { %2428 = vmatpush3.bf16.xpose.msra.mxu1 %v348_v0 }
 0x39c   :  { %2433 = vmatprep.subr.bf16.mxu1 %v2782_v36 }
 0x39d   :  { %v392_v2 = vpop.permute.xlu1 %391  ;;  %v443_v7 = vpop.permute.xlu0 %442 }
 0x3a1   :  { %v445_v4 = vpop.permute.xlu1 %444  ;;  %v494_v9 = vpop.permute.xlu0 %493 }
 0x3a2   :  { %2430 = vmatmul.mubr.msk.bf16.vlgmr.msra.gmra.mrb[4].mxu1 %vm343_vm3, %v2995_v62  ;;  %v450_v5 = vsel %vm343_vm3, %v445_v4, 0 }
 0x3a3   :  { %2434 = vmatpush3.bf16.xpose.msra.mxu1 %v399_v3  ;;  %2435 = vmatprep.mubr.msk.bf16.mxu1 %vm2783_vm2, %v2782_v36 }
 0x3a4   :  { %2439 = vmatprep.subr.bf16.mxu1 %v2782_v36 }
 0x3a5   :  { %v496_v6 = vpop.permute.xlu1 %495 }
 0x3a6   :  { %v501_v8 = vsel %vm343_vm3, %v496_v6, 0 }
 0x3aa   :  { %2436 = vmatmul.mubr.msk.bf16.vlgmr.msra.gmra.mrb[8].mxu1 %vm343_vm3, %v392_v2 }
 0x3ab   :  { %2440 = vmatpush3.bf16.xpose.msra.mxu1 %v450_v5  ;;  %2441 = vmatprep.mubr.msk.bf16.mxu1 %vm2783_vm2, %v2782_v36 }
 0x3ac   :  { %2445 = vmatprep.subr.bf16.mxu1 %v2782_v36 }
 0x3b2   :  { %2442 = vmatmul.mubr.msk.bf16.vlgmr.msra.gmra.mrb[12].mxu1 %vm343_vm3, %v443_v7 }
 0x3b3   :  { %2446 = vmatpush3.bf16.xpose.msra.mxu1 %v501_v8  ;;  %2447 = vmatprep.mubr.msk.bf16.mxu1 %vm2783_vm2, %v2782_v36 }
 0x3b4   :  { %2451 = vmatprep.subr.bf16.mxu1 %v2782_v36 }
 0x3ba   :  { %2448 = vmatmul.mubr.msk.bf16.vlgmr.msra.gmra.mrb[16].mxu1 %vm343_vm3, %v494_v9 }
 0x3bb   :  { %2453 = vmatprep.mubr.msk.bf16.mxu1 %vm2783_vm2, %v2782_v36 }
 0x475   :  { %v384_v11 = vpop.f32.mrb[4].mxu1 }
 0x476   :  { %v552_v13 = vadd.f32 %v3035_v10, %v384_v11  ;;  %v2431_v14 = vpop.f32.mrb[5].mxu1 }
 0x477   :  { %v387_v15 = vpop.f32.mrb[6].mxu1 }
 0x478   :  { %v553_v16 = vadd.f32 %v3040_v12, %v387_v15  ;;  %v2432_v17 = vpop.f32.mrb[7].mxu1  ;;  %v561_v19 = vsel %vm560_vm4, %v552_v13, -inf }
 0x479   :  { %562 = vmax.xlane.f32.xlu1 %v561_v19 }
 0x47a   :  { %v564_v20 = vsel %vm560_vm4, %v553_v16, -inf }
 0x47b   :  { %565 = vmax.xlane.f32.xlu0 %v564_v20 }
 0x47d   :  { %v435_v23 = vpop.f32.mrb[8].mxu1 }
 0x47e   :  { %v554_v25 = vadd.f32 %v3049_v22, %v435_v23  ;;  %v2437_v26 = vpop.f32.mrb[9].mxu1 }
 0x47f   :  { %v438_v27 = vpop.f32.mrb[10].mxu1 }
 0x480   :  { %v555_v28 = vadd.f32 %v3054_v24, %v438_v27  ;;  %v2438_v29 = vpop.f32.mrb[11].mxu1  ;;  %v567_v30 = vsel %vm560_vm4, %v554_v25, -inf }
 0x481   :  { %568 = vmax.xlane.f32.xlu0 %v567_v30 }
 0x482   :  { %v570_v32 = vsel %vm560_vm4, %v555_v28, -inf }
 0x485   :  { %571 = vmax.xlane.f32.xlu0 %v570_v32  ;;  %v486_v33 = vpop.f32.mrb[12].mxu1 }
 0x486   :  { %v556_v35 = vadd.f32 %v3062_v31, %v486_v33  ;;  %v2443_v37 = vpop.f32.mrb[13].mxu1 }
 0x487   :  { %v489_v38 = vpop.f32.mrb[14].mxu1 }
 0x488   :  { %v557_v39 = vadd.f32 %v3068_v34, %v489_v38  ;;  %v2444_v40 = vpop.f32.mrb[15].mxu1  ;;  %v573_v41 = vsel %vm560_vm4, %v556_v35, -inf }
 0x489   :  { %574 = vmax.xlane.f32.xlu1 %v573_v41 }
 0x48a   :  { %v576_v42 = vsel %vm560_vm4, %v557_v39, -inf }
 0x48b   :  { %577 = vmax.xlane.f32.xlu0 %v576_v42 }
 0x48d   :  { %v537_v44 = vpop.f32.mrb[16].mxu1 }
 0x48e   :  { %v558_v46 = vadd.f32 %v3077_v43, %v537_v44  ;;  %v2449_v47 = vpop.f32.mrb[17].mxu1 }
 0x48f   :  { %v540_v48 = vpop.f32.mrb[18].mxu1 }
 0x490   :  { %v559_v49 = vadd.f32 %v3082_v45, %v540_v48  ;;  %v2450_v50 = vpop.f32.mrb[19].mxu1  ;;  %v579_v51 = vsel %vm560_vm4, %v558_v46, -inf }
 0x491   :  { %580 = vmax.xlane.f32.xlu1 %v579_v51 }
 0x492   :  { %v582_v52 = vsel %vm560_vm4, %v559_v49, -inf }
 0x493   :  { %583 = vmax.xlane.f32.xlu0 %v582_v52 }
 0x4a2   :  { %653 = vrot.lane.b32.xlu1 %v2995_v62, %s3465_s1  ;;  %s3484_s1 = smov 8  }
 0x506   :  { %v563_v53 = vpop.xlane.xlu1 %562 }
 0x507   :  { %v585_v54 = vsub.f32 %v552_v13, %v563_v53 }
 0x508   :  { %v566_v55 = vpop.xlane.xlu0 %565 }
 0x509   :  { %v593_v56 = vmul.f32 1.442695, %v585_v54  ;;  %v586_v57 = vsub.f32 %v553_v16, %v566_v55 }
 0x50b   :  { %2689 = vpow2.f32 %v593_v56  ;;  %v595_v58 = vmul.f32 1.442695, %v586_v57 }
 0x50d   :  { %2691 = vpow2.f32 %v595_v58 }
 0x50e   :  { %v569_v59 = vpop.xlane.xlu0 %568 }
 0x50f   :  { %v587_v60 = vsub.f32 %v554_v25, %v569_v59 }
 0x511   :  { %v597_v61 = vmul.f32 1.442695, %v587_v60 }
 0x512   :  { %v572_v63 = vpop.xlane.xlu0 %571 }
 0x513   :  { %2693 = vpow2.f32 %v597_v61  ;;  %v588_v0 = vsub.f32 %v555_v28, %v572_v63 }
 0x515   :  { %v2690_v1 = vpop.eup %2689  ;;  %v599_v2 = vmul.f32 1.442695, %v588_v0 }
 0x516   :  { %v575_v3 = vpop.xlane.xlu1 %574  ;;  %v609_v4 = vsel %vm560_vm4, %v2690_v1, 0.0 }
 0x517   :  { %v2692_v5 = vpop.eup %2691  ;;  %2695 = vpow2.f32 %v599_v2  ;;  %v589_v6 = vsub.f32 %v556_v35, %v575_v3  ;;  %610 = vadd.xlane.f32.xlu1 %v609_v4 }
 0x518   :  { %v578_v7 = vpop.xlane.xlu0 %577  ;;  %v612_v8 = vsel %vm560_vm4, %v2692_v5, 0.0 }
 0x519   :  { %v601_v9 = vmul.f32 1.442695, %v589_v6  ;;  %v590_v11 = vsub.f32 %v557_v39, %v578_v7  ;;  %613 = vadd.xlane.f32.xlu0 %v612_v8 }
 0x51b   :  { %2697 = vpow2.f32 %v601_v9  ;;  %v603_v13 = vmul.f32 1.442695, %v590_v11 }
 0x51d   :  { %v3092_v14 = vpop.eup %2693  ;;  %2699 = vpow2.f32 %v603_v13 }
 0x51e   :  { %v581_v15 = vpop.xlane.xlu1 %580  ;;  %v615_v16 = vsel %vm560_vm4, %v3092_v14, 0.0 }
 0x51f   :  { %v591_v17 = vsub.f32 %v558_v46, %v581_v15  ;;  %616 = vadd.xlane.f32.xlu1 %v615_v16  ;;  %v2665_v15 = vld [vmem:[%s3439_s9] sm:$0xff]  }
 0x520   :  { %v584_v19 = vpop.xlane.xlu0 %583 }
 0x521   :  { %v2696_v20 = vpop.eup %2695  ;;  %v605_v23 = vmul.f32 1.442695, %v591_v17  ;;  %v592_v25 = vsub.f32 %v559_v49, %v584_v19  ;;  %v2666_v19 = vld [vmem:[%s3439_s9 + $0x8] sm:$0xff]  }
 0x522   :  { %v654_v26 = vpop.permute.xlu1 %653  ;;  %v618_v27 = vsel %vm560_vm4, %v2696_v20, 0.0 }
 0x523   :  { %2701 = vpow2.f32 %v605_v23  ;;  %v607_v28 = vmul.f32 1.442695, %v592_v25  ;;  %2452 = vmatpush3.bf16.msra.mxu1 %v654_v26  ;;  %619 = vadd.xlane.f32.xlu0 %v618_v27 }
 0x524   :  { %2463 = vmatprep.subr.bf16.mxu1 %v2782_v36 }
 0x525   :  { %v2698_v29 = vpop.eup %2697  ;;  %2703 = vpow2.f32 %v607_v28 }
 0x526   :  { %v621_v30 = vsel %vm560_vm4, %v2698_v29, 0.0 }
 0x527   :  { %v2700_v32 = vpop.eup %2699  ;;  %622 = vadd.xlane.f32.xlu1 %v621_v30 }
 0x528   :  { %v624_v33 = vsel %vm560_vm4, %v2700_v32, 0.0 }
 0x529   :  { %625 = vadd.xlane.f32.xlu0 %v624_v33 }
 0x52d   :  { %v2702_v35 = vpop.eup %2701 }
 0x52e   :  { %v627_v37 = vsel %vm560_vm4, %v2702_v35, 0.0 }
 0x52f   :  { %v2704_v38 = vpop.eup %2703  ;;  %628 = vadd.xlane.f32.xlu1 %v627_v37 }
 0x530   :  { %v630_v39 = vsel %vm560_vm4, %v2704_v38, 0.0 }
 0x531   :  { %631 = vadd.xlane.f32.xlu0 %v630_v39 }
 0x540   :  { %747 = vrot.lane.b32.xlu1 %v2995_v62, %s3464_s2  ;;  %s3485_s2 = smov 16  }
 0x544   :  { %794 = vrot.lane.b32.xlu1 %v2995_v62, %s3460_s25  ;;  %s3461_s25 = smov 24  }
 0x547   :  { %700 = vrot.lane.b32.xlu0 %v2995_v62, %s3459_s7 }
 0x5a4   :  { %v611_v40 = vpop.xlane.xlu1 %610 }
 0x5a5   :  { %2705 = vrcp.f32 %v611_v40 }
 0x5a6   :  { %v614_v41 = vpop.xlane.xlu0 %613 }
 0x5a7   :  { %2707 = vrcp.f32 %v614_v41 }
 0x5ac   :  { %v617_v44 = vpop.xlane.xlu1 %616 }
 0x5af   :  { %v2706_v42 = vpop.eup %2705 }
 0x5b0   :  { %v620_v46 = vpop.xlane.xlu0 %619  ;;  %v641_v48 = vmul.f32 %v2706_v42, %v2690_v1 }
 0x5b1   :  { %v2708_v47 = vpop.eup %2707  ;;  %2709 = vrcp.f32 %v620_v46 }
 0x5b2   :  { %v642_v49 = vmul.f32 %v2708_v47, %v2692_v5  ;;  %2711 = vrcp.f32 %v617_v44 }
 0x5b4   :  { %v623_v50 = vpop.xlane.xlu1 %622  ;;  %v649_v51 = vpack.c.bf16 %v642_v49, %v641_v48 }
 0x5b5   :  { %2713 = vrcp.f32 %v623_v50 }
 0x5b6   :  { %2454 = vmatmul.mubr.msk.bf16.vlgmr.msra.gmra.mrb[20].mxu1 %vm560_vm4, %v649_v51  ;;  %v626_v52 = vpop.xlane.xlu0 %625 }
 0x5b7   :  { %2715 = vrcp.f32 %v626_v52  ;;  %2465 = vmatprep.mubr.msk.bf16.mxu1 %vm2783_vm2, %v2782_v36 }
 0x5bb   :  { %v2710_v53 = vpop.eup %2709 }
 0x5bc   :  { %v629_v62 = vpop.xlane.xlu1 %628  ;;  %v2712_v54 = vpop.eup %2711  ;;  %v644_v57 = vmul.f32 %v2710_v53, %v2696_v20 }
 0x5bd   :  { %2717 = vrcp.f32 %v629_v62  ;;  %v643_v60 = vmul.f32 %v2712_v54, %v3092_v14 }
 0x5be   :  { %v632_v55 = vpop.xlane.xlu0 %631 }
 0x5bf   :  { %v2714_v56 = vpop.eup %2713  ;;  %2719 = vrcp.f32 %v632_v55  ;;  %v650_v1 = vpack.c.bf16 %v644_v57, %v643_v60 }
 0x5c0   :  { %v748_v58 = vpop.permute.xlu1 %747  ;;  %v645_v61 = vmul.f32 %v2714_v56, %v2698_v29  ;;  %v2272_v56 = vld [vmem:[%s3440_s10] ss:$0 sm:$0xff] }
 0x5c1   :  { %v2716_v59 = vpop.eup %2715  ;;  %2464 = vmatpush3.bf16.msra.mxu1 %v748_v58 }
 0x5c2   :  { %v646_v63 = vmul.f32 %v2716_v59, %v2700_v32  ;;  %v701_v0 = vpop.permute.xlu0 %700  ;;  %2475 = vmatprep.subr.bf16.mxu1 %v2782_v36 }
 0x5c3   :  { %2458 = vmatpush3.bf16.msra.mxu0 %v701_v0 }
 0x5c4   :  { %v651_v2 = vpack.c.bf16 %v646_v63, %v645_v61  ;;  %2469 = vmatprep.subr.bf16.mxu0 %v2782_v36  ;;  %v795_v3 = vpop.permute.xlu1 %794 }
 0x5c6   :  { %2460 = vmatmul.mubr.msk.bf16.vlgmr.msra.gmra.mrb[4].mxu0 %vm560_vm4, %v650_v1  ;;  %2466 = vmatmul.mubr.msk.bf16.vlgmr.msra.gmra.mrb[24].mxu1 %vm560_vm4, %v651_v2 }
 0x5c7   :  { %v2718_v4 = vpop.eup %2717  ;;  %2470 = vmatpush3.bf16.msra.mxu0 %v795_v3  ;;  %2471 = vmatprep.mubr.msk.bf16.mxu0 %vm2783_vm2, %v2782_v36 }
 0x5c8   :  { %2479 = vmatprep.mubr.msk.bf16.mxu1 %vm2783_vm2, %v2782_v36  ;;  %2483 = vmatprep.subr.bf16.mxu0 %v2782_v36  ;;  %v647_v6 = vmul.f32 %v2718_v4, %v2702_v35 }
 0x5c9   :  { %v2720_v5 = vpop.eup %2719  ;;  %2476 = vmatpush3.bf16.msra.mxu1 %v2665_v15  ;;  %v2668_v15 = vld [vmem:[%s3441_s13 + $0x8] sm:$0xff]  }
 0x5ca   :  { %v648_v7 = vmul.f32 %v2720_v5, %v2704_v38  ;;  %2477 = vmatprep.subr.bf16.mxu1 %v2782_v36 }
 0x5cc   :  { %v652_v8 = vpack.c.bf16 %v648_v7, %v647_v6 }
 0x5cd   :  { %2478 = vmatpush3.bf16.msra.mxu1 %v2666_v19 }
 0x5ce   :  { %2472 = vmatmul.mubr.msk.bf16.vlgmr.msra.gmra.mrb[8].mxu0 %vm560_vm4, %v652_v8  ;;  %2491 = vmatprep.subr.bf16.mxu1 %v2782_v36 }
 0x5cf   :  { %2487 = vmatprep.mubr.msk.bf16.mxu0 %vm2783_vm2, %v2782_v36 }
 0x689   :  { %v693_v9 = vpop.f32.mrb[20].mxu1 }
 0x68a   :  { %v2455_v11 = vpop.f32.mrb[21].mxu1 }
 0x68b   :  { %v696_v13 = vpop.f32.mrb[22].mxu1 }
 0x68c   :  { %v2456_v14 = vpop.f32.mrb[23].mxu1 }
 0x68d   :  { %v2667_v14 = vld [vmem:[%s3441_s13] sm:$0xff]  }
 0x68e   :  { %2484 = vmatpush3.bf16.msra.mxu0 %v2667_v14 }
 0x68f   :  { %2485 = vmatprep.subr.bf16.mxu0 %v2782_v36 }
 0x692   :  { %2486 = vmatpush3.bf16.msra.mxu0 %v2668_v15 }
 0x693   :  { %2503 = vmatprep.subr.bf16.mxu0 %v2782_v36 }
 0x699   :  { %v740_v16 = vpop.f32.mrb[4].mxu0  ;;  %v787_v17 = vpop.f32.mrb[24].mxu1 }
 0x69a   :  { %v2461_v20 = vpop.f32.mrb[5].mxu0  ;;  %v2467_v23 = vpop.f32.mrb[25].mxu1 }
 0x69b   :  { %v743_v25 = vpop.f32.mrb[6].mxu0  ;;  %v790_v26 = vpop.f32.mrb[26].mxu1 }
 0x69c   :  { %v2618_v27 = vpack.i.bf16 %v743_v25, %v740_v16  ;;  %v2623_v28 = vpack.i.bf16 %v790_v26, %v787_v17  ;;  %v2462_v29 = vpop.f32.mrb[7].mxu0  ;;  %v2468_v30 = vpop.f32.mrb[27].mxu1 }
 0x69e   :  { %2619 = vrot.lane.b32.xlu1 %v2618_v27, %s3463_s28  ;;  %2624 = vrot.lane.b32.xlu0 %v2623_v28, %s3462_s0  ;;  %v2276_v28 = vld [vmem:[%s3442_s11] ss:$0 sm:$0xff] }
 0x6a1   :  { %v834_v32 = vpop.f32.mrb[8].mxu0 }
 0x6a2   :  { %v2473_v33 = vpop.f32.mrb[9].mxu0 }
 0x6a3   :  { %v837_v35 = vpop.f32.mrb[10].mxu0  ;;  %v2277_v33 = vld [vmem:[%s3443_s12] ss:$0 sm:$0xff] }
 0x6a4   :  { %v2628_v37 = vpack.i.bf16 %v837_v35, %v834_v32  ;;  %v2474_v38 = vpop.f32.mrb[11].mxu0 }
 0x6a6   :  { %2629 = vrot.lane.b32.xlu1 %v2628_v37, %s3461_s25 }
 0x710   :  { %v2620_v39 = vpop.permute.xlu1 %2619  ;;  %v2625_v42 = vpop.permute.xlu0 %2624 }
 0x711   :  { %v2622_v40 = vunpack.i.h.bf16 %v2620_v39  ;;  %v2621_v41 = vunpack.i.l.bf16 %v2620_v39  ;;  %v2627_v44 = vunpack.i.h.bf16 %v2625_v42  ;;  %v2626_v46 = vunpack.i.l.bf16 %v2625_v42  ;;  %v2671_v42 = vld [vmem:[%s3444_s15 + $0x10] sm:$0xff]  }
 0x713   :  { %v865_v47 = vsel %vm343_vm3, %v693_v9, %v2621_v41  ;;  %v866_v48 = vsel %vm343_vm3, %v696_v13, %v2622_v40  ;;  %v2669_v40 = vld [vmem:[%s3444_s15] sm:$0xff]   ;;  %v2670_v41 = vld [vmem:[%s3444_s15 + $0x8] sm:$0xff]  }
 0x714   :  { %v868_v52 = vsel %vm560_vm4, %v866_v48, %v2627_v44  ;;  %v867_v62 = vsel %vm560_vm4, %v865_v47, %v2626_v46  ;;  %v2672_v44 = vld [vmem:[%s3444_s15 + $0x18] sm:$0xff]   ;;  %v2278_v46 = vld [vmem:[%s3445_s14] ss:$0 sm:$0xff] }
 0x718   :  { %v2630_v49 = vpop.permute.xlu1 %2629 }
 0x719   :  { %v2632_v50 = vunpack.i.h.bf16 %v2630_v49  ;;  %v2631_v51 = vunpack.i.l.bf16 %v2630_v49 }
 0x71b   :  { %v870_v53 = vsel %vm869_vm5, %v867_v62, %v2631_v51  ;;  %v871_v54 = vsel %vm869_vm5, %v868_v52, %v2632_v50 }
 0x71c   :  { %v872_v55 = vpack.c.bf16 %v871_v54, %v870_v53 }
 0x71e   :  { %2480 = vmatmul.mubr.msk.bf16.vlgmr.msra.gmra.mrb[28].mxu1 %vm227_vm1, %v872_v55 }
 0x71f   :  { %2499 = vmatprep.mubr.msk.bf16.mxu1 %vm2783_vm2, %v2782_v36  ;;  %2492 = vmatpush3.bf16.msra.mxu1 %v2669_v40  ;;  %v2291_v40 = vld [vmem:[%s3478_s27 + $0x1] ss:$0 sm:$0xff]  ;;  %s3481_s27 = smov 48  }
 0x720   :  { %2493 = vmatprep.subr.bf16.mxu1 %v2782_v36 }
 0x723   :  { %2494 = vmatpush3.bf16.msra.mxu1 %v2670_v41 }
 0x724   :  { %2495 = vmatprep.subr.bf16.mxu1 %v2782_v36 }
 0x727   :  { %2496 = vmatpush3.bf16.msra.mxu1 %v2671_v42 }
 0x728   :  { %2497 = vmatprep.subr.bf16.mxu1 %v2782_v36 }
 0x72b   :  { %2498 = vmatpush3.bf16.msra.mxu1 %v2672_v44 }
 0x72c   :  { %2517 = vmatprep.subr.bf16.mxu1 %v2782_v36 }
 0x7f1   :  { %v933_v57 = vpop.f32.mrb[28].mxu1 }
 0x7f2   :  { %v934_v58 = vadd.f32 %v2272_v56, %v933_v57  ;;  %v2481_v59 = vpop.f32.mrb[29].mxu1 }
 0x7f3   :  { %v936_v60 = vpop.f32.mrb[30].mxu1 }
 0x7f4   :  { %v3148_v61 = vadd.f32 %v934_v58, %v2957_v18  ;;  %v937_v63 = vadd.f32 %v2272_v56, %v936_v60  ;;  %v2482_v0 = vpop.f32.mrb[31].mxu1 }
 0x7f6   :  { %v3151_v1 = vadd.f32 %v937_v63, %v2959_v21  ;;  %v944_v2 = vsel %vm227_vm1, %v3148_v61, 0.0 }
 0x7f7   :  { %945 = vadd.xlane.f32.xlu0 %v944_v2  ;;  %v2282_v2 = vld [vmem:[%s3446_s16] ss:$0 sm:$0xff] }
 0x7f8   :  { %v947_v3 = vsel %vm227_vm1, %v3151_v1, 0.0 }
 0x7f9   :  { %948 = vadd.xlane.f32.xlu1 %v947_v3 }
 0x884   :  { %v946_v4 = vpop.xlane.xlu0 %945 }
 0x885   :  { %v950_v5 = vmul.f32 0.03125, %v946_v4 }
 0x886   :  { %v949_v6 = vpop.xlane.xlu1 %948 }
 0x887   :  { %v952_v7 = vsub.f32 %v3148_v61, %v950_v5  ;;  %v951_v18 = vmul.f32 0.03125, %v949_v6 }
 0x889   :  { %v953_v8 = vsub.f32 %v3151_v1, %v951_v18  ;;  %v954_v9 = vmul.f32 %v952_v7, %v952_v7 }
 0x88b   :  { %v956_v21 = vsel %vm227_vm1, %v954_v9, 0.0  ;;  %v955_v11 = vmul.f32 %v953_v8, %v953_v8 }
 0x88c   :  { %957 = vadd.xlane.f32.xlu0 %v956_v21 }
 0x88d   :  { %v959_v13 = vsel %vm227_vm1, %v955_v11, 0.0 }
 0x890   :  { %960 = vadd.xlane.f32.xlu0 %v959_v13 }
 0x919   :  { %v958_v16 = vpop.xlane.xlu0 %957 }
 0x91a   :  { %v962_v17 = vmul.f32 0.03125, %v958_v16 }
 0x91c   :  { %v964_v19 = vadd.f32 1e-12, %v962_v17 }
 0x91d   :  { %v961_v20 = vpop.xlane.xlu0 %960 }
 0x91e   :  { %2721 = vrsqrt.f32 %v964_v19  ;;  %v963_v23 = vmul.f32 0.03125, %v961_v20 }
 0x920   :  { %v965_v25 = vadd.f32 1e-12, %v963_v23 }
 0x922   :  { %2723 = vrsqrt.f32 %v965_v25  ;;  %v2673_v25 = vld [vmem:[%s3476_s5 + $0x10] sm:$0xff]  }
 0x928   :  { %v2722_v26 = vpop.eup %2721 }
 0x929   :  { %v968_v27 = vmul.f32 %v2722_v26, %v952_v7  ;;  %v2674_v26 = vld [vmem:[%s3476_s5 + $0x18] sm:$0xff]  }
 0x92b   :  { %v976_v30 = vmul.f32 %v2276_v28, %v968_v27 }
 0x92c   :  { %v2724_v29 = vpop.eup %2723 }
 0x92d   :  { %v969_v32 = vmul.f32 %v2724_v29, %v953_v8  ;;  %v984_v37 = vadd.f32 %v2277_v33, %v976_v30 }
 0x92f   :  { %v977_v35 = vmul.f32 %v2276_v28, %v969_v32 }
 0x931   :  { %v985_v38 = vadd.f32 %v2277_v33, %v977_v35 }
 0x933   :  { %v986_v39 = vpack.c.bf16 %v985_v38, %v984_v37  ;;  %v2290_v37 = vld [vmem:[%s3477_s24 + $0x1] ss:$0 sm:$0xff]  ;;  %s3480_s24 = smov 64  }
 0x935   :  { %2488 = vmatmul.mubr.msk.bf16.vlgmr.msra.gmra.mrb[12].mxu0 %vm227_vm1, %v986_v39 }
 0x936   :  { %2507 = vmatprep.mubr.msk.bf16.mxu0 %vm2783_vm2, %v2782_v36  ;;  %2504 = vmatpush3.bf16.msra.mxu0 %v2673_v25 }
 0x937   :  { %2505 = vmatprep.subr.bf16.mxu0 %v2782_v36 }
 0x93a   :  { %2506 = vmatpush3.bf16.msra.mxu0 %v2674_v26 }
 0x93b   :  { %2511 = vmatprep.subr.bf16.mxu0 %v2782_v36 }
 0xa08   :  { %v1047_v47 = vpop.f32.mrb[12].mxu0 }
 0xa09   :  { %v1048_v48 = vadd.f32 %v2278_v46, %v1047_v47  ;;  %v2489_v49 = vpop.f32.mrb[13].mxu0 }
 0xa0a   :  { %v1050_v50 = vpop.f32.mrb[14].mxu0  ;;  %v2297_v49 = vld [vmem:[%s3437_s8 + $0x1] ss:$0 sm:$0xff]  ;;  %s3479_s8 = smov 112  }
 0xa0b   :  { %v1056_v51 = vmul.f32 0.70710677, %v1048_v48  ;;  %v1051_v52 = vadd.f32 %v2278_v46, %v1050_v50  ;;  %v2490_v62 = vpop.f32.mrb[15].mxu0  ;;  %v1054_v57 = vmul.f32 0.5, %v1048_v48 }
 0xa0d   :  { %2725 = verf.f32 %v1056_v51  ;;  %v1057_v53 = vmul.f32 0.70710677, %v1051_v52  ;;  %v1055_v58 = vmul.f32 0.5, %v1051_v52 }
 0xa0f   :  { %2727 = verf.f32 %v1057_v53 }
 0xa17   :  { %v2726_v54 = vpop.eup %2725 }
 0xa18   :  { %v1060_v55 = vadd.f32 1.0, %v2726_v54 }
 0xa19   :  { %v2728_v56 = vpop.eup %2727 }
 0xa1a   :  { %v1061_v59 = vadd.f32 1.0, %v2728_v56  ;;  %v1062_v60 = vmul.f32 %v1060_v55, %v1054_v57 }
 0xa1c   :  { %v1063_v63 = vmul.f32 %v1061_v59, %v1055_v58 }
 0xa1e   :  { %v1064_v0 = vpack.c.bf16 %v1063_v63, %v1062_v60 }
 0xa20   :  { %2500 = vmatmul.mubr.msk.bf16.vlgmr.msra.gmra.mrb[32].mxu1 %vm180_vm0, %v1064_v0 }
 0xa21   :  { %2519 = vmatprep.mubr.msk.bf16.mxu1 %vm2783_vm2, %v2782_v36 }
 0xaf3   :  { %v1141_v3 = vpop.f32.mrb[32].mxu1 }
 0xaf4   :  { %v1142_v4 = vadd.f32 %v2282_v2, %v1141_v3  ;;  %v2501_v5 = vpop.f32.mrb[33].mxu1 }
 0xaf5   :  { %v1144_v6 = vpop.f32.mrb[34].mxu1 }
 0xaf6   :  { %v3204_v7 = vadd.f32 %v1142_v4, %v3148_v61  ;;  %v1145_v18 = vadd.f32 %v2282_v2, %v1144_v6  ;;  %v2502_v8 = vpop.f32.mrb[35].mxu1 }
 0xaf8   :  { %v3207_v9 = vadd.f32 %v1145_v18, %v3151_v1  ;;  %v1154_v21 = vsel %vm227_vm1, %v3204_v7, 0.0 }
 0xaf9   :  { %1155 = vadd.xlane.f32.xlu0 %v1154_v21 }
 0xafa   :  { %v1157_v11 = vsel %vm227_vm1, %v3207_v9, 0.0 }
 0xafb   :  { %1158 = vadd.xlane.f32.xlu1 %v1157_v11 }
 0xb86   :  { %v1156_v13 = vpop.xlane.xlu0 %1155 }
 0xb87   :  { %v1160_v14 = vmul.f32 0.03125, %v1156_v13 }
 0xb88   :  { %v1159_v15 = vpop.xlane.xlu1 %1158 }
 0xb89   :  { %v1162_v16 = vsub.f32 %v3204_v7, %v1160_v14  ;;  %v1161_v61 = vmul.f32 0.03125, %v1159_v15 }
 0xb8b   :  { %v1163_v17 = vsub.f32 %v3207_v9, %v1161_v61  ;;  %v1164_v19 = vmul.f32 %v1162_v16, %v1162_v16 }
 0xb8d   :  { %v1166_v1 = vsel %vm227_vm1, %v1164_v19, 0.0  ;;  %v1165_v20 = vmul.f32 %v1163_v17, %v1163_v17 }
 0xb8e   :  { %1167 = vadd.xlane.f32.xlu0 %v1166_v1 }
 0xb8f   :  { %v1169_v23 = vsel %vm227_vm1, %v1165_v20, 0.0 }
 0xb90   :  { %1170 = vadd.xlane.f32.xlu1 %v1169_v23 }
 0xc1b   :  { %v1168_v27 = vpop.xlane.xlu0 %1167 }
 0xc1c   :  { %v1172_v28 = vmul.f32 0.03125, %v1168_v27 }
 0xc1d   :  { %v1171_v29 = vpop.xlane.xlu1 %1170 }
 0xc1e   :  { %v1174_v30 = vadd.f32 1e-12, %v1172_v28  ;;  %v1173_v32 = vmul.f32 0.03125, %v1171_v29 }
 0xc20   :  { %2729 = vrsqrt.f32 %v1174_v30  ;;  %v1175_v33 = vadd.f32 1e-12, %v1173_v32 }
 0xc22   :  { %2731 = vrsqrt.f32 %v1175_v33 }
 0xc2a   :  { %v2730_v35 = vpop.eup %2729 }
 0xc2b   :  { %v1178_v38 = vmul.f32 %v2730_v35, %v1162_v16 }
 0xc2c   :  { %v2732_v39 = vpop.eup %2731 }
 0xc2d   :  { %v1186_v41 = vmul.f32 %v2290_v37, %v1178_v38  ;;  %v1179_v42 = vmul.f32 %v2732_v39, %v1163_v17 }
 0xc2f   :  { %v1187_v44 = vmul.f32 %v2290_v37, %v1179_v42  ;;  %v1194_v46 = vadd.f32 %v2291_v40, %v1186_v41 }
 0xc31   :  { %v1195_v47 = vadd.f32 %v2291_v40, %v1187_v44 }
 0xc33   :  { %v1196_v48 = vpack.c.bf16 %v1195_v47, %v1194_v46 }
 0xc35   :  { %2508 = vmatmul.mubr.msk.bf16.vlgmr.msra.gmra.mrb[16].mxu0 %vm227_vm1, %v1196_v48 }
 0xc36   :  { %2513 = vmatprep.mubr.msk.bf16.mxu0 %vm2783_vm2, %v2782_v36 }
 0xd08   :  { %v1259_v50 = vpop.f32.mrb[16].mxu0 }
 0xd09   :  { %v2509_v51 = vpop.f32.mrb[17].mxu0  ;;  %v1260_v62 = vadd.f32 %v2297_v49, %v1259_v50 }
 0xd0a   :  { %v1262_v52 = vpop.f32.mrb[18].mxu0 }
 0xd0b   :  { %v1263_v53 = vadd.f32 %v2297_v49, %v1262_v52  ;;  %v2510_v54 = vpop.f32.mrb[19].mxu0 }
 0xd0d   :  { %v3237_v55 = vpack.c.bf16 %v1263_v53, %v1260_v62 }
 0xd0f   :  { %1319 = vrot.lane.b32.xlu1 %v3237_v55, %s2784_s29  ;;  %1268 = vrot.lane.b32.xlu0 %v3237_v55, %s2785_s4  ;;  %s3482_s29 = smov 40   ;;  %s3483_s4 = smov 56  }
 0xd13   :  { %1370 = vrot.lane.b32.xlu1 %v3237_v55, %s2788_s30  ;;  %1421 = vrot.lane.b32.xlu0 %v3237_v55, %s2790_s23 }
 0xd17   :  { %1317 = vrot.lane.b32.xlu1 %v3237_v55, %s2786_s26  ;;  %1419 = vrot.lane.b32.xlu0 %v3237_v55, %s2789_s6 }
 0xd1b   :  { %1368 = vrot.lane.b32.xlu1 %v3237_v55, %s3479_s8 }
 0xd81   :  { %v1320_v56 = vpop.permute.xlu1 %1319  ;;  %v1269_v57 = vpop.permute.xlu0 %1268 }
 0xd82   :  { %v1325_v58 = vsel %vm343_vm3, %v1320_v56, 0  ;;  %v1274_v59 = vsel %vm343_vm3, %v1269_v57, 0 }
 0xd83   :  { %2512 = vmatpush3.bf16.xpose.msra.mxu0 %v1274_v59  ;;  %2518 = vmatpush3.bf16.xpose.msra.mxu1 %v1325_v58 }
 0xd84   :  { %2523 = vmatprep.subr.bf16.mxu0 %v2782_v36  ;;  %2529 = vmatprep.subr.bf16.mxu1 %v2782_v36 }
 0xd85   :  { %v1371_v60 = vpop.permute.xlu1 %1370  ;;  %v1422_v63 = vpop.permute.xlu0 %1421 }
 0xd86   :  { %v1376_v2 = vsel %vm343_vm3, %v1371_v60, 0  ;;  %v1427_v3 = vsel %vm343_vm3, %v1422_v63, 0 }
 0xd89   :  { %v1318_v0 = vpop.permute.xlu1 %1317  ;;  %v1420_v4 = vpop.permute.xlu0 %1419 }
 0xd8a   :  { %2514 = vmatmul.mubr.msk.bf16.vlgmr.msra.gmra.mrb[20].mxu0 %vm343_vm3, %v3237_v55  ;;  %2520 = vmatmul.mubr.msk.bf16.vlgmr.msra.gmra.mrb[36].mxu1 %vm343_vm3, %v1318_v0 }
 0xd8b   :  { %2524 = vmatpush3.bf16.xpose.msra.mxu0 %v1376_v2  ;;  %2530 = vmatpush3.bf16.xpose.msra.mxu1 %v1427_v3 }
 0xd8c   :  { %2525 = vmatprep.mubr.msk.bf16.mxu0 %vm2783_vm2, %v2782_v36  ;;  %2531 = vmatprep.mubr.msk.bf16.mxu1 %vm2783_vm2, %v2782_v36 }
 0xd8d   :  { %2535 = vmatprep.subr.bf16.mxu0 %v2782_v36  ;;  %2541 = vmatprep.subr.bf16.mxu1 %v2782_v36  ;;  %v1369_v5 = vpop.permute.xlu1 %1368 }
 0xd92   :  { %2526 = vmatmul.mubr.msk.bf16.vlgmr.msra.gmra.mrb[24].mxu0 %vm343_vm3, %v1369_v5  ;;  %2532 = vmatmul.mubr.msk.bf16.vlgmr.msra.gmra.mrb[40].mxu1 %vm343_vm3, %v1420_v4 }
 0xd93   :  { %2537 = vmatprep.mubr.msk.bf16.mxu0 %vm2783_vm2, %v2782_v36  ;;  %2543 = vmatprep.mubr.msk.bf16.mxu1 %vm2783_vm2, %v2782_v36 }
 0xe5d   :  { %v1310_v6 = vpop.f32.mrb[20].mxu0  ;;  %v1361_v18 = vpop.f32.mrb[36].mxu1 }
 0xe5e   :  { %v1470_v8 = vadd.f32 %v1310_v6, %v3035_v10  ;;  %v1472_v21 = vadd.f32 %v1361_v18, %v3049_v22  ;;  %v2515_v11 = vpop.f32.mrb[21].mxu0  ;;  %v2521_v13 = vpop.f32.mrb[37].mxu1 }
 0xe5f   :  { %v1313_v14 = vpop.f32.mrb[22].mxu0  ;;  %v1364_v15 = vpop.f32.mrb[38].mxu1 }
 0xe60   :  { %v1471_v16 = vadd.f32 %v1313_v14, %v3040_v12  ;;  %v2516_v61 = vpop.f32.mrb[23].mxu0  ;;  %v2522_v17 = vpop.f32.mrb[39].mxu1  ;;  %v1478_v19 = vsel %vm560_vm4, %v1470_v8, -inf  ;;  %v1484_v1 = vsel %vm560_vm4, %v1472_v21, -inf  ;;  %v1473_v20 = vadd.f32 %v1364_v15, %v3054_v24 }
 0xe61   :  { %1479 = vmax.xlane.f32.xlu1 %v1478_v19  ;;  %1485 = vmax.xlane.f32.xlu0 %v1484_v1 }
 0xe62   :  { %v1481_v10 = vsel %vm560_vm4, %v1471_v16, -inf  ;;  %v1487_v24 = vsel %vm560_vm4, %v1473_v20, -inf }
 0xe65   :  { %v1412_v23 = vpop.f32.mrb[24].mxu0  ;;  %1482 = vmax.xlane.f32.xlu0 %v1481_v10  ;;  %v1463_v22 = vpop.f32.mrb[40].mxu1 }
 0xe66   :  { %v1474_v25 = vadd.f32 %v1412_v23, %v3062_v31  ;;  %v2527_v26 = vpop.f32.mrb[25].mxu0  ;;  %v2533_v27 = vpop.f32.mrb[41].mxu1  ;;  %v1476_v29 = vadd.f32 %v1463_v22, %v3077_v43 }
 0xe67   :  { %v1415_v12 = vpop.f32.mrb[26].mxu0  ;;  %v1466_v28 = vpop.f32.mrb[42].mxu1 }
 0xe68   :  { %v1475_v30 = vadd.f32 %v1415_v12, %v3068_v34  ;;  %v2528_v32 = vpop.f32.mrb[27].mxu0  ;;  %v2534_v33 = vpop.f32.mrb[43].mxu1  ;;  %v1490_v35 = vsel %vm560_vm4, %v1474_v25, -inf  ;;  %v1477_v37 = vadd.f32 %v1466_v28, %v3082_v45  ;;  %v1496_v38 = vsel %vm560_vm4, %v1476_v29, -inf }
 0xe69   :  { %1491 = vmax.xlane.f32.xlu1 %v1490_v35  ;;  %1488 = vmax.xlane.f32.xlu0 %v1487_v24 }
 0xe6a   :  { %v1493_v31 = vsel %vm560_vm4, %v1475_v30, -inf  ;;  %v1499_v43 = vsel %vm560_vm4, %v1477_v37, -inf }
 0xe6d   :  { %1494 = vmax.xlane.f32.xlu0 %v1493_v31  ;;  %1497 = vmax.xlane.f32.xlu1 %v1496_v38 }
 0xe71   :  { %1500 = vmax.xlane.f32.xlu0 %v1499_v43 }
 0xe7e   :  { %1570 = vrot.lane.b32.xlu1 %v3237_v55, %s3480_s24 }
 0xeee   :  { %v1480_v34 = vpop.xlane.xlu1 %1479  ;;  %v1486_v39 = vpop.xlane.xlu0 %1485 }
 0xeef   :  { %v1502_v40 = vsub.f32 %v1470_v8, %v1480_v34  ;;  %v1504_v41 = vsub.f32 %v1472_v21, %v1486_v39 }
 0xef1   :  { %v1510_v42 = vmul.f32 1.442695, %v1502_v40  ;;  %v1514_v44 = vmul.f32 1.442695, %v1504_v41 }
 0xef2   :  { %v1483_v46 = vpop.xlane.xlu0 %1482 }
 0xef3   :  { %2733 = vpow2.f32 %v1510_v42  ;;  %v1503_v45 = vsub.f32 %v1471_v16, %v1483_v46 }
 0xef4   :  { %2735 = vpow2.f32 %v1514_v44 }
 0xef5   :  { %v1512_v47 = vmul.f32 1.442695, %v1503_v45 }
 0xef6   :  { %v1492_v48 = vpop.xlane.xlu1 %1491  ;;  %v1489_v49 = vpop.xlane.xlu0 %1488 }
 0xef7   :  { %2737 = vpow2.f32 %v1512_v47  ;;  %v1506_v50 = vsub.f32 %v1474_v25, %v1492_v48  ;;  %v1505_v51 = vsub.f32 %v1473_v20, %v1489_v49 }
 0xef9   :  { %v1518_v52 = vmul.f32 1.442695, %v1506_v50  ;;  %v1516_v62 = vmul.f32 1.442695, %v1505_v51 }
 0xefa   :  { %v1495_v53 = vpop.xlane.xlu0 %1494  ;;  %v1498_v54 = vpop.xlane.xlu1 %1497 }
 0xefb   :  { %2739 = vpow2.f32 %v1518_v52  ;;  %v1507_v56 = vsub.f32 %v1475_v30, %v1495_v53  ;;  %v1508_v57 = vsub.f32 %v1476_v29, %v1498_v54  ;;  %v2675_v52 = vld [vmem:[%s3439_s9 + $0x10] sm:$0xff]  }
 0xefc   :  { %2741 = vpow2.f32 %v1516_v62 }
 0xefd   :  { %v2734_v58 = vpop.eup %2733  ;;  %v1520_v59 = vmul.f32 1.442695, %v1507_v56  ;;  %v1522_v60 = vmul.f32 1.442695, %v1508_v57  ;;  %v2676_v57 = vld [vmem:[%s3439_s9 + $0x18] sm:$0xff]   ;;  %s3486_s9 = smov 24  }
 0xefe   :  { %v1571_v63 = vpop.permute.xlu1 %1570  ;;  %v1501_v0 = vpop.xlane.xlu0 %1500  ;;  %v1526_v2 = vsel %vm560_vm4, %v2734_v58, 0.0 }
 0xeff   :  { %v2736_v3 = vpop.eup %2735  ;;  %2743 = vpow2.f32 %v1520_v59  ;;  %v1509_v4 = vsub.f32 %v1477_v37, %v1501_v0  ;;  %1527 = vadd.xlane.f32.xlu1 %v1526_v2  ;;  %2536 = vmatpush3.bf16.msra.mxu0 %v1571_v63 }
 0xf00   :  { %2745 = vpow2.f32 %v1522_v60  ;;  %2547 = vmatprep.subr.bf16.mxu0 %v2782_v36  ;;  %v1532_v18 = vsel %vm560_vm4, %v2736_v3, 0.0 }
 0xf01   :  { %v2738_v5 = vpop.eup %2737  ;;  %v1524_v6 = vmul.f32 1.442695, %v1509_v4 }
 0xf02   :  { %v1529_v8 = vsel %vm560_vm4, %v2738_v5, 0.0 }
 0xf03   :  { %2747 = vpow2.f32 %v1524_v6  ;;  %1533 = vadd.xlane.f32.xlu1 %v1532_v18  ;;  %1530 = vadd.xlane.f32.xlu0 %v1529_v8 }
 0xf05   :  { %v2740_v21 = vpop.eup %2739 }
 0xf06   :  { %v2742_v11 = vpop.eup %2741  ;;  %v1538_v13 = vsel %vm560_vm4, %v2740_v21, 0.0 }
 0xf07   :  { %1539 = vadd.xlane.f32.xlu1 %v1538_v13  ;;  %v1535_v14 = vsel %vm560_vm4, %v2742_v11, 0.0 }
 0xf08   :  { %1536 = vadd.xlane.f32.xlu0 %v1535_v14 }
 0xf09   :  { %v2744_v15 = vpop.eup %2743 }
 0xf0a   :  { %v2746_v16 = vpop.eup %2745  ;;  %v1541_v61 = vsel %vm560_vm4, %v2744_v15, 0.0 }
 0xf0b   :  { %v1544_v17 = vsel %vm560_vm4, %v2746_v16, 0.0 }
 0xf0c   :  { %1545 = vadd.xlane.f32.xlu1 %v1544_v17  ;;  %1542 = vadd.xlane.f32.xlu0 %v1541_v61 }
 0xf0d   :  { %v2748_v19 = vpop.eup %2747 }
 0xf0e   :  { %v1547_v1 = vsel %vm560_vm4, %v2748_v19, 0.0 }
 0xf10   :  { %1548 = vadd.xlane.f32.xlu0 %v1547_v1 }
 0xf1d   :  { %1664 = vrot.lane.b32.xlu1 %v3237_v55, %s3481_s27 }
 0xf21   :  { %1711 = vrot.lane.b32.xlu1 %v3237_v55, %s3482_s29 }
 0xf26   :  { %1617 = vrot.lane.b32.xlu0 %v3237_v55, %s3483_s4 }
 0xf8c   :  { %v1528_v20 = vpop.xlane.xlu1 %1527 }
 0xf8d   :  { %2749 = vrcp.f32 %v1528_v20 }
 0xf90   :  { %v1534_v10 = vpop.xlane.xlu1 %1533  ;;  %v1531_v23 = vpop.xlane.xlu0 %1530 }
 0xf91   :  { %2751 = vrcp.f32 %v1531_v23 }
 0xf92   :  { %2753 = vrcp.f32 %v1534_v10 }
 0xf94   :  { %v1540_v22 = vpop.xlane.xlu1 %1539 }
 0xf95   :  { %v1537_v25 = vpop.xlane.xlu0 %1536 }
 0xf96   :  { %2755 = vrcp.f32 %v1537_v25 }
 0xf97   :  { %2757 = vrcp.f32 %v1540_v22  ;;  %v2750_v12 = vpop.eup %2749 }
 0xf98   :  { %v1558_v29 = vmul.f32 %v2750_v12, %v2734_v58  ;;  %v2314_v12 = vld [vmem:[%s3440_s10 + $0x1] ss:$0 sm:$0xff] }
 0xf99   :  { %v1546_v26 = vpop.xlane.xlu1 %1545  ;;  %v1543_v27 = vpop.xlane.xlu0 %1542 }
 0xf9a   :  { %2759 = vrcp.f32 %v1543_v27 }
 0xf9b   :  { %v2752_v28 = vpop.eup %2751  ;;  %2761 = vrcp.f32 %v1546_v26 }
 0xf9c   :  { %v1559_v30 = vmul.f32 %v2752_v28, %v2738_v5  ;;  %v2754_v55 = vpop.eup %2753 }
 0xf9d   :  { %v1549_v32 = vpop.xlane.xlu0 %1548  ;;  %v1665_v33 = vpop.permute.xlu1 %1664  ;;  %v1560_v37 = vmul.f32 %v2754_v55, %v2736_v3 }
 0xf9e   :  { %2763 = vrcp.f32 %v1549_v32  ;;  %v1566_v35 = vpack.c.bf16 %v1559_v30, %v1558_v29 }
 0xfa0   :  { %v2756_v24 = vpop.eup %2755  ;;  %2538 = vmatmul.mubr.msk.bf16.vlgmr.msra.gmra.mrb[28].mxu0 %vm560_vm4, %v1566_v35 }
 0xfa1   :  { %v1561_v31 = vmul.f32 %v2756_v24, %v2742_v11  ;;  %v1618_v38 = vpop.permute.xlu0 %1617  ;;  %2548 = vmatpush3.bf16.msra.mxu0 %v1665_v33  ;;  %v2758_v43 = vpop.eup %2757  ;;  %2549 = vmatprep.mubr.msk.bf16.mxu0 %vm2783_vm2, %v2782_v36 }
 0xfa2   :  { %2542 = vmatpush3.bf16.msra.mxu1 %v1618_v38  ;;  %2559 = vmatprep.subr.bf16.mxu0 %v2782_v36  ;;  %v1712_v40 = vpop.permute.xlu1 %1711  ;;  %v1562_v42 = vmul.f32 %v2758_v43, %v2740_v21 }
 0xfa3   :  { %v1567_v34 = vpack.c.bf16 %v1561_v31, %v1560_v37  ;;  %2553 = vmatprep.subr.bf16.mxu1 %v2782_v36 }
 0xfa4   :  { %v2760_v39 = vpop.eup %2759 }
 0xfa5   :  { %2544 = vmatmul.mubr.msk.bf16.vlgmr.msra.gmra.mrb[44].mxu1 %vm560_vm4, %v1567_v34  ;;  %v2762_v41 = vpop.eup %2761  ;;  %v1563_v44 = vmul.f32 %v2760_v39, %v2744_v15 }
 0xfa6   :  { %2554 = vmatpush3.bf16.msra.mxu1 %v1712_v40  ;;  %2555 = vmatprep.mubr.msk.bf16.mxu1 %vm2783_vm2, %v2782_v36  ;;  %v1564_v47 = vmul.f32 %v2762_v41, %v2746_v16 }
 0xfa7   :  { %2567 = vmatprep.subr.bf16.mxu1 %v2782_v36  ;;  %v1568_v45 = vpack.c.bf16 %v1563_v44, %v1562_v42 }
 0xfa8   :  { %v2764_v46 = vpop.eup %2763 }
 0xfa9   :  { %v1565_v48 = vmul.f32 %v2764_v46, %v2748_v19  ;;  %2550 = vmatmul.mubr.msk.bf16.vlgmr.msra.gmra.mrb[32].mxu0 %vm560_vm4, %v1568_v45  ;;  %v2677_v46 = vld [vmem:[%s3441_s13 + $0x10] sm:$0xff]   ;;  %v2678_v45 = vld [vmem:[%s3441_s13 + $0x18] sm:$0xff]  }
 0xfaa   :  { %2563 = vmatprep.mubr.msk.bf16.mxu0 %vm2783_vm2, %v2782_v36  ;;  %2560 = vmatpush3.bf16.msra.mxu0 %v2675_v52 }
 0xfab   :  { %v1569_v49 = vpack.c.bf16 %v1565_v48, %v1564_v47  ;;  %2561 = vmatprep.subr.bf16.mxu0 %v2782_v36 }
 0xfad   :  { %2556 = vmatmul.mubr.msk.bf16.vlgmr.msra.gmra.mrb[48].mxu1 %vm560_vm4, %v1569_v49 }
 0xfae   :  { %2571 = vmatprep.mubr.msk.bf16.mxu1 %vm2783_vm2, %v2782_v36  ;;  %2562 = vmatpush3.bf16.msra.mxu0 %v2676_v57 }
 0xfaf   :  { %2575 = vmatprep.subr.bf16.mxu0 %v2782_v36  ;;  %2568 = vmatpush3.bf16.msra.mxu1 %v2677_v46 }
 0xfb0   :  { %2569 = vmatprep.subr.bf16.mxu1 %v2782_v36 }
 0xfb3   :  { %2570 = vmatpush3.bf16.msra.mxu1 %v2678_v45 }
 0xfb4   :  { %2587 = vmatprep.subr.bf16.mxu1 %v2782_v36 }
0x1073   :  { %v1610_v50 = vpop.f32.mrb[28].mxu0 }
0x1074   :  { %v2539_v51 = vpop.f32.mrb[29].mxu0 }
0x1075   :  { %v1613_v62 = vpop.f32.mrb[30].mxu0 }
0x1076   :  { %v2540_v53 = vpop.f32.mrb[31].mxu0 }
0x1078   :  { %v1657_v54 = vpop.f32.mrb[44].mxu1 }
0x1079   :  { %v2545_v56 = vpop.f32.mrb[45].mxu1 }
0x107a   :  { %v1660_v58 = vpop.f32.mrb[46].mxu1 }
0x107b   :  { %v2633_v59 = vpack.i.bf16 %v1660_v58, %v1657_v54  ;;  %v2546_v60 = vpop.f32.mrb[47].mxu1  ;;  %v2320_v54 = vld [vmem:[%s3442_s11 + $0x1] ss:$0 sm:$0xff] }
0x107c   :  { %v1704_v63 = vpop.f32.mrb[32].mxu0 }
0x107d   :  { %2634 = vrot.lane.b32.xlu1 %v2633_v59, %s3484_s1  ;;  %v2551_v0 = vpop.f32.mrb[33].mxu0  ;;  %v2321_v59 = vld [vmem:[%s3443_s12 + $0x1] ss:$0 sm:$0xff] }
0x107e   :  { %v1707_v2 = vpop.f32.mrb[34].mxu0 }
0x107f   :  { %v2638_v3 = vpack.i.bf16 %v1707_v2, %v1704_v63  ;;  %v2552_v4 = vpop.f32.mrb[35].mxu0 }
0x1080   :  { %v1751_v5 = vpop.f32.mrb[48].mxu1  ;;  %v2680_v4 = vld [vmem:[%s3444_s15 + $0x28] sm:$0xff]  }
0x1081   :  { %v2557_v6 = vpop.f32.mrb[49].mxu1  ;;  %2639 = vrot.lane.b32.xlu0 %v2638_v3, %s3485_s2  ;;  %v2679_v3 = vld [vmem:[%s3444_s15 + $0x20] sm:$0xff]  }
0x1082   :  { %v1754_v18 = vpop.f32.mrb[50].mxu1  ;;  %v2682_v6 = vld [vmem:[%s3444_s15 + $0x38] sm:$0xff]  }
0x1083   :  { %v2643_v8 = vpack.i.bf16 %v1754_v18, %v1751_v5  ;;  %v2558_v21 = vpop.f32.mrb[51].mxu1  ;;  %v2681_v5 = vld [vmem:[%s3444_s15 + $0x30] sm:$0xff]   ;;  %v2327_v18 = vld [vmem:[%s3445_s14 + $0x1] ss:$0 sm:$0xff] }
0x1085   :  { %2644 = vrot.lane.b32.xlu1 %v2643_v8, %s3486_s9 }
0x10ef   :  { %v2635_v11 = vpop.permute.xlu1 %2634 }
0x10f0   :  { %v2637_v13 = vunpack.i.h.bf16 %v2635_v11  ;;  %v2636_v14 = vunpack.i.l.bf16 %v2635_v11 }
0x10f2   :  { %v1783_v19 = vsel %vm343_vm3, %v1613_v62, %v2637_v13  ;;  %v1782_v1 = vsel %vm343_vm3, %v1610_v50, %v2636_v14 }
0x10f3   :  { %v2640_v15 = vpop.permute.xlu0 %2639 }
0x10f4   :  { %v2642_v16 = vunpack.i.h.bf16 %v2640_v15  ;;  %v2641_v61 = vunpack.i.l.bf16 %v2640_v15 }
0x10f6   :  { %v1784_v23 = vsel %vm560_vm4, %v1782_v1, %v2641_v61  ;;  %v1785_v22 = vsel %vm560_vm4, %v1783_v19, %v2642_v16 }
0x10f7   :  { %v2645_v17 = vpop.permute.xlu1 %2644 }
0x10f8   :  { %v2647_v20 = vunpack.i.h.bf16 %v2645_v17  ;;  %v2646_v10 = vunpack.i.l.bf16 %v2645_v17 }
0x10fa   :  { %v1787_v25 = vsel %vm869_vm5, %v1785_v22, %v2647_v20  ;;  %v1786_v26 = vsel %vm869_vm5, %v1784_v23, %v2646_v10 }
0x10fb   :  { %v1788_v27 = vpack.c.bf16 %v1787_v25, %v1786_v26 }
0x10fd   :  { %2564 = vmatmul.mubr.msk.bf16.vlgmr.msra.gmra.mrb[36].mxu0 %vm227_vm1, %v1788_v27  ;;  %v2340_v27 = vld [vmem:[%s3446_s16 + $0x1] ss:$0 sm:$0xff] }
0x10fe   :  { %2583 = vmatprep.mubr.msk.bf16.mxu0 %vm2783_vm2, %v2782_v36  ;;  %2576 = vmatpush3.bf16.msra.mxu0 %v2679_v3  ;;  %v2684_v3 = vld [vmem:[%s3447_s19 + $0x8] sm:$0xff]  }
0x10ff   :  { %2577 = vmatprep.subr.bf16.mxu0 %v2782_v36 }
0x1102   :  { %2578 = vmatpush3.bf16.msra.mxu0 %v2680_v4  ;;  %v26_v4 = vstv %s3451_s20 }
0x1103   :  { %2579 = vmatprep.subr.bf16.mxu0 %v2782_v36  ;;  %27 = vst [vmem:[#allocation2] sm:$0x1] %v26_v4 }
0x1106   :  { %2580 = vmatpush3.bf16.msra.mxu0 %v2681_v5 }
0x1107   :  { %2581 = vmatprep.subr.bf16.mxu0 %v2782_v36 }
0x110a   :  { %2582 = vmatpush3.bf16.msra.mxu0 %v2682_v6 }
0x11d0   :  { %v1851_v28 = vpop.f32.mrb[36].mxu0 }
0x11d1   :  { %v1852_v29 = vadd.f32 %v2314_v12, %v1851_v28  ;;  %v2565_v30 = vpop.f32.mrb[37].mxu0 }
0x11d2   :  { %v1854_v32 = vpop.f32.mrb[38].mxu0 }
0x11d3   :  { %v3346_v55 = vadd.f32 %v1852_v29, %v3204_v7  ;;  %v1855_v33 = vadd.f32 %v2314_v12, %v1854_v32  ;;  %v2566_v35 = vpop.f32.mrb[39].mxu0 }
0x11d5   :  { %v3349_v24 = vadd.f32 %v1855_v33, %v3207_v9  ;;  %v1864_v37 = vsel %vm227_vm1, %v3346_v55, 0.0 }
0x11d6   :  { %1865 = vadd.xlane.f32.xlu0 %v1864_v37 }
0x11d7   :  { %v1867_v31 = vsel %vm227_vm1, %v3349_v24, 0.0 }
0x11d8   :  { %1868 = vadd.xlane.f32.xlu1 %v1867_v31 }
0x1263   :  { %v1866_v38 = vpop.xlane.xlu0 %1865 }
0x1264   :  { %v1870_v43 = vmul.f32 0.03125, %v1866_v38 }
0x1265   :  { %v1869_v34 = vpop.xlane.xlu1 %1868 }
0x1266   :  { %v1872_v39 = vsub.f32 %v3346_v55, %v1870_v43  ;;  %v1871_v7 = vmul.f32 0.03125, %v1869_v34 }
0x1268   :  { %v1873_v40 = vsub.f32 %v3349_v24, %v1871_v7  ;;  %v1874_v41 = vmul.f32 %v1872_v39, %v1872_v39 }
0x126a   :  { %v1876_v9 = vsel %vm227_vm1, %v1874_v41, 0.0  ;;  %v1875_v42 = vmul.f32 %v1873_v40, %v1873_v40 }
0x126b   :  { %1877 = vadd.xlane.f32.xlu0 %v1876_v9 }
0x126c   :  { %v1879_v44 = vsel %vm227_vm1, %v1875_v42, 0.0 }
0x126f   :  { %1880 = vadd.xlane.f32.xlu0 %v1879_v44 }
0x12f8   :  { %v1878_v47 = vpop.xlane.xlu0 %1877 }
0x12f9   :  { %v1882_v48 = vmul.f32 0.03125, %v1878_v47 }
0x12fb   :  { %v1884_v49 = vadd.f32 1e-12, %v1882_v48 }
0x12fc   :  { %v1881_v50 = vpop.xlane.xlu0 %1880 }
0x12fd   :  { %2765 = vrsqrt.f32 %v1884_v49  ;;  %v1883_v51 = vmul.f32 0.03125, %v1881_v50 }
0x12ff   :  { %v1885_v52 = vadd.f32 1e-12, %v1883_v51  ;;  %v2346_v51 = vld [vmem:[%s3448_s17] ss:$0 sm:$0xff] }
0x1301   :  { %2767 = vrsqrt.f32 %v1885_v52 }
0x1307   :  { %v2766_v62 = vpop.eup %2765 }
0x1308   :  { %v1888_v53 = vmul.f32 %v2766_v62, %v1872_v39 }
0x130a   :  { %v1896_v57 = vmul.f32 %v2320_v54, %v1888_v53 }
0x130b   :  { %v2768_v56 = vpop.eup %2767 }
0x130c   :  { %v1889_v58 = vmul.f32 %v2768_v56, %v1873_v40  ;;  %v1904_v63 = vadd.f32 %v2321_v59, %v1896_v57  ;;  %v2347_v56 = vld [vmem:[%s3449_s18] ss:$0 sm:$0xff] }
0x130e   :  { %v1897_v60 = vmul.f32 %v2320_v54, %v1889_v58 }
0x1310   :  { %v1905_v0 = vadd.f32 %v2321_v59, %v1897_v60  ;;  %v2118_v60 = vld [vmem:[%s3450_s3] sm:$0x3] }
0x1312   :  { %v1906_v2 = vpack.c.bf16 %v1905_v0, %v1904_v63  ;;  %v2119_v0 = vpack.c.bf16 %v2118_v60, %v2118_v60 }
0x1314   :  { %2572 = vmatmul.mubr.msk.bf16.vlgmr.msra.gmra.mrb[52].mxu1 %vm227_vm1, %v1906_v2  ;;  %v2683_v2 = vld [vmem:[%s3447_s19] sm:$0xff]  }
0x1315   :  { %2589 = vmatprep.mubr.msk.bf16.mxu1 %vm2783_vm2, %v2782_v36 }
0x13e7   :  { %v1969_v8 = vpop.f32.mrb[52].mxu1 }
0x13e8   :  { %v1970_v21 = vadd.f32 %v2327_v18, %v1969_v8  ;;  %v2573_v11 = vpop.f32.mrb[53].mxu1 }
0x13e9   :  { %v1972_v13 = vpop.f32.mrb[54].mxu1  ;;  %v2349_v11 = vld [vmem:[#allocation2] ss:$0 sm:$0xff] }
0x13ea   :  { %v1978_v14 = vmul.f32 0.70710677, %v1970_v21  ;;  %v1973_v15 = vadd.f32 %v2327_v18, %v1972_v13  ;;  %v2574_v16 = vpop.f32.mrb[55].mxu1  ;;  %v1976_v20 = vmul.f32 0.5, %v1970_v21 }
0x13ec   :  { %2769 = verf.f32 %v1978_v14  ;;  %v1979_v61 = vmul.f32 0.70710677, %v1973_v15  ;;  %v1977_v10 = vmul.f32 0.5, %v1973_v15 }
0x13ee   :  { %2771 = verf.f32 %v1979_v61 }
0x13f6   :  { %v2770_v17 = vpop.eup %2769 }
0x13f7   :  { %v1982_v19 = vadd.f32 1.0, %v2770_v17 }
0x13f8   :  { %v2772_v1 = vpop.eup %2771 }
0x13f9   :  { %v1983_v23 = vadd.f32 1.0, %v2772_v1  ;;  %v1984_v22 = vmul.f32 %v1982_v19, %v1976_v20 }
0x13fb   :  { %v1985_v25 = vmul.f32 %v1983_v23, %v1977_v10 }
0x13fd   :  { %v1986_v26 = vpack.c.bf16 %v1985_v25, %v1984_v22 }
0x13ff   :  { %2584 = vmatmul.mubr.msk.bf16.vlgmr.msra.gmra.mrb[40].mxu0 %vm180_vm0, %v1986_v26 }
0x14d2   :  { %v2065_v12 = vpop.f32.mrb[40].mxu0 }
0x14d3   :  { %v2066_v28 = vadd.f32 %v2340_v27, %v2065_v12  ;;  %v2585_v29 = vpop.f32.mrb[41].mxu0 }
0x14d4   :  { %v2068_v30 = vpop.f32.mrb[42].mxu0 }
0x14d5   :  { %v2069_v32 = vadd.f32 %v2340_v27, %v2068_v30  ;;  %v2586_v33 = vpop.f32.mrb[43].mxu0  ;;  %v2072_v35 = vadd.f32 %v2066_v28, %v3346_v55 }
0x14d7   :  { %v2076_v37 = vsel %vm227_vm1, %v2072_v35, 0.0  ;;  %v2073_v31 = vadd.f32 %v2069_v32, %v3349_v24 }
0x14d8   :  { %2077 = vadd.xlane.f32.xlu0 %v2076_v37 }
0x14d9   :  { %v2079_v38 = vsel %vm227_vm1, %v2073_v31, 0.0 }
0x14da   :  { %2080 = vadd.xlane.f32.xlu1 %v2079_v38 }
0x1565   :  { %v2078_v43 = vpop.xlane.xlu0 %2077 }
0x1566   :  { %v2082_v34 = vmul.f32 0.03125, %v2078_v43 }
0x1567   :  { %v2081_v39 = vpop.xlane.xlu1 %2080 }
0x1568   :  { %v2084_v7 = vsub.f32 %v2072_v35, %v2082_v34  ;;  %v2083_v40 = vmul.f32 0.03125, %v2081_v39 }
0x156a   :  { %v2085_v41 = vsub.f32 %v2073_v31, %v2083_v40  ;;  %v2086_v9 = vmul.f32 %v2084_v7, %v2084_v7 }
0x156c   :  { %v2088_v42 = vsel %vm227_vm1, %v2086_v9, 0.0  ;;  %v2087_v44 = vmul.f32 %v2085_v41, %v2085_v41 }
0x156d   :  { %2089 = vadd.xlane.f32.xlu0 %v2088_v42 }
0x156e   :  { %v2091_v55 = vsel %vm227_vm1, %v2087_v44, 0.0 }
0x156f   :  { %2092 = vadd.xlane.f32.xlu1 %v2091_v55 }
0x15fa   :  { %v2090_v46 = vpop.xlane.xlu0 %2089 }
0x15fb   :  { %v2094_v24 = vmul.f32 0.03125, %v2090_v46 }
0x15fc   :  { %v2093_v45 = vpop.xlane.xlu1 %2092 }
0x15fd   :  { %v2096_v47 = vadd.f32 1e-12, %v2094_v24  ;;  %v2095_v48 = vmul.f32 0.03125, %v2093_v45 }
0x15ff   :  { %2773 = vrsqrt.f32 %v2096_v47  ;;  %v2097_v49 = vadd.f32 1e-12, %v2095_v48 }
0x1601   :  { %2775 = vrsqrt.f32 %v2097_v49 }
0x1609   :  { %v2774_v50 = vpop.eup %2773 }
0x160a   :  { %v2100_v52 = vmul.f32 %v2774_v50, %v2084_v7 }
0x160b   :  { %v2776_v62 = vpop.eup %2775 }
0x160c   :  { %v2101_v53 = vmul.f32 %v2776_v62, %v2085_v41  ;;  %v2108_v54 = vmul.f32 %v2346_v51, %v2100_v52 }
0x160e   :  { %v2109_v57 = vmul.f32 %v2346_v51, %v2101_v53  ;;  %v2116_v58 = vadd.f32 %v2347_v56, %v2108_v54 }
0x1610   :  { %v2117_v59 = vadd.f32 %v2347_v56, %v2109_v57 }
0x1612   :  { %v2120_v63 = vpack.c.bf16 %v2117_v59, %v2116_v58 }
0x1614   :  { %2588 = vmatpush3.bf16.msra.mxu1 %v2120_v63 }
0x1615   :  { %2593 = vmatprep.subr.bf16.mxu1 %v2782_v36 }
0x1617   :  { %2590 = vmatmul.mubr.msk.bf16.vlgmr.msra.gmra.mrb[56].mxu1 %vm560_vm4, %v2119_v0 }
0x1618   :  { %2594 = vmatpush3.bf16.msra.mxu1 %v2683_v2  ;;  %2597 = vmatprep.mubr.msk.bf16.mxu1 %vm2783_vm2, %v2782_v36 }
0x1619   :  { %2595 = vmatprep.subr.bf16.mxu1 %v2782_v36 }
0x161c   :  { %2596 = vmatpush3.bf16.msra.mxu1 %v2684_v3 }
0x16ea   :  { %v2158_v5 = vpop.f32.mrb[56].mxu1 }
0x16eb   :  { %v2164_v6 = vpack.c.bf16 %v2158_v5, %v2158_v5  ;;  %v2591_v18 = vpop.f32.mrb[57].mxu1 }
0x16ec   :  { %v2161_v8 = vpop.f32.mrb[58].mxu1 }
0x16ed   :  { %v2592_v21 = vpop.f32.mrb[59].mxu1  ;;  %2598 = vmatmul.mubr.msk.bf16.vlgmr.msra.gmra.mrb[60].mxu1 %vm227_vm1, %v2164_v6 }
0x17c0   :  { %v2225_v13 = vpop.f32.mrb[60].mxu1 }
0x17c1   :  { %v2226_v36 = vadd.f32 %v2349_v11, %v2225_v13  ;;  %v2599_v14 = vpop.f32.mrb[61].mxu1 }
0x17c2   :  { %v2228_v15 = vpop.f32.mrb[62].mxu1 }
0x17c3   :  { %v2353_v16 = vmul.f32 -1.442695, %v2226_v36  ;;  %v2600_v61 = vpop.f32.mrb[63].mxu1 }
0x17c5   :  { %2777 = vpow2.f32 %v2353_v16 }
0x17cf   :  { %v2778_v17 = vpop.eup %2777 }
0x17d0   :  { %v2234_v19 = vadd.f32 1.0, %v2778_v17 }
0x17d2   :  { %2779 = vrcp.f32 %v2234_v19 }
0x17dc   :  { %v2780_v1 = vpop.eup %2779 }
0x17dd   :  { %2238 = vst.msk [vmem:[%s3452_s21] sm:$0x3] %vm2237_vm6, %v2780_v1 }

</bundles_post_ra>
